<compile_context>
chip_gen: v7x
topology: tpu7x:2x2x1
jax: 0.10.0
libtpu: 0.0.40
codegen_flags: <defaults>
</compile_context>

<pallas_src>
import functools

import jax
import jax.numpy as jnp
from jax.experimental import pallas as pl
from jax.experimental.pallas import tpu as pltpu


def _round_up(v, m):
    return ((v + m - 1) // m) * m


# ------------------------------ Pallas kernel ------------------------------ #

def _fused_subsample_kernel(x4_ref, w1_ref, b1_ref, w2_ref, b2_ref, wl_ref,
                            bl_ref, o_ref, *, t2_tile, f2, odim):
    """Conv(1->odim,3,2)+ReLU -> Conv(odim->odim,3,2)+ReLU -> Linear, fused.

    x4_ref holds this (batch, time-tile)'s input rows in mod-4 space-to-depth
    layout: x4[rt*4+rf, j, i] = x[4*i + rt, 4*j + rf], so every conv tap below
    is a contiguous slice.
    """
    a_len = t2_tile + 1          # conv1 output rows per time-parity group
    b_len = f2 + 1               # conv1 output cols per freq-parity group

    x4 = x4_ref[0, 0].astype(jnp.float32)     # (16, f2+2, t2_tile+2)
    b1 = b1_ref[...]                          # (1, odim)

    # ---- stage 1: Conv2d(1, odim, 3, stride 2) + ReLU ---------------------
    # 9 VPU multiply-accumulates on shifted x slices, computed per output
    # parity group (pt, pf); y1 stays in VMEM (parity-split: groups[pt][pf]).
    groups = []
    for pt in (0, 1):
        row = []
        for pf in (0, 1):
            acc = jnp.zeros((b_len, a_len, odim), jnp.float32)
            for kh in range(3):
                for kw in range(3):
                    ro = 2 * pt + kh
                    co = 2 * pf + kw
                    xs = x4[(ro % 4) * 4 + (co % 4),
                            co // 4:co // 4 + b_len,
                            ro // 4:ro // 4 + a_len]             # (b_len, a_len)
                    wk = w1_ref[3 * kh + kw:3 * kh + kw + 1, :]   # (1, odim)
                    acc = acc + xs[:, :, None] * wk
            row.append(jnp.maximum(acc + b1, 0.0).astype(jnp.bfloat16))
        groups.append(row)

    # ---- stage 2: Conv2d(odim, odim, 3, stride 2) + ReLU ------------------
    # 9 accumulated lane-dense MXU matmuls (K = odim per tap) over contiguous
    # slices of the parity-split y1.  Rows are ordered (f2, t2); t2_tile is a
    # multiple of 8 so the flattening never crosses the lane axis.
    rows = f2 * t2_tile
    h = jnp.zeros((rows, odim), jnp.float32)
    for kh in range(3):
        for kw in range(3):
            g = groups[kh % 2][kw % 2]
            lhs = g[kw // 2:kw // 2 + f2, kh // 2:kh // 2 + t2_tile, :]
            lhs = lhs.reshape(rows, odim)
            wk = w2_ref[(3 * kh + kw) * odim:(3 * kh + kw + 1) * odim, :]
            h = h + jnp.dot(lhs, wk, preferred_element_type=jnp.float32)
    h = jnp.maximum(h + b2_ref[...], 0.0)

    # ---- final Linear, accumulated over the freq axis (f2 matmuls) --------
    out = jnp.zeros((t2_tile, odim), jnp.float32)
    for f in range(f2):
        hs = h[f * t2_tile:(f + 1) * t2_tile, :].astype(jnp.bfloat16)
        out = out + jnp.dot(hs, wl_ref[f * odim:(f + 1) * odim, :],
                            preferred_element_type=jnp.float32)
    out = out + bl_ref[...]
    o_ref[0] = out.astype(o_ref.dtype)


# -------------------------------- JAX glue --------------------------------- #

def _build_x4(x, t2_tile, num_tiles, f2):
    """(B, T, idim) -> (B, N, 16, f2+2, t2_tile+2): mod-4 space-to-depth of the
    (overlapping) per-tile input window.  Cheap (x-sized), keeps the kernel's
    conv taps contiguous."""
    B, T, idim = x.shape
    j_len = f2 + 2
    i_len = t2_tile + 2
    tp = 4 * (num_tiles * t2_tile + 2)          # >= T + 2 always
    fp = 4 * j_len                              # >= idim always
    xp = jnp.pad(x, ((0, 0), (0, tp - T), (0, fp - idim)))
    xr = xp.reshape(B, tp // 4, 4, j_len, 4)    # [b, tq, rt, j, rf]
    idx = (jnp.arange(num_tiles) * t2_tile)[:, None] + jnp.arange(i_len)[None, :]
    xg = xr[:, idx]                             # [b, n, i, rt, j, rf]
    x4 = jnp.transpose(xg, (0, 1, 3, 5, 4, 2))  # [b, n, rt, rf, j, i]
    return x4.reshape(B, num_tiles, 16, j_len, i_len)


def _vmem_estimate_bytes(t2_tile, f2, odim):
    a_len, b_len = t2_tile + 1, f2 + 1
    i_len, j_len = t2_tile + 2, f2 + 2
    weights = (9 * odim + 3 * odim) * 4 + (9 + f2) * odim * odim * 2
    io = 16 * j_len * i_len * 4 + t2_tile * odim * 4
    inter = (4 * b_len * a_len * odim * 2 + b_len * a_len * odim * 4
             + 3 * f2 * t2_tile * odim * 4 + 2 * t2_tile * odim * 4)
    return 2 * (weights + io) + inter


def get_out_seq_lens(in_seq_lens):
    # TODO(synk): torch returns int64 (.long()); JAX here returns int32.
    out = in_seq_lens.astype(jnp.int32)
    for _ in range(2):
        out = (out - 1) // 2 + 1
    return out


def conv2d_subsampling4_forward(params, x, x_length, *, max_t2_tile=64):
    """x: (B, T, idim) f32, x_length: (B,) int32 -> ((B, T2, odim), (B,))."""
    B, T, idim = x.shape
    odim = params["b1"].shape[0]
    f1 = (idim - 3) // 2 + 1
    t1 = (T - 3) // 2 + 1
    f2 = (f1 - 3) // 2 + 1
    t2 = (t1 - 3) // 2 + 1

    # Time tile: multiple of 8; auto-shrunk to fit VMEM on all generations.
    t2_tile = min(max_t2_tile, _round_up(t2, 8))
    while t2_tile > 8 and _vmem_estimate_bytes(t2_tile, f2, odim) > 40 * 2**20:
        t2_tile //= 2
    num_tiles = pl.cdiv(t2, t2_tile)

    x4 = _build_x4(x.astype(jnp.float32), t2_tile, num_tiles, f2)
    w1r = jnp.transpose(params["w1"][:, 0], (1, 2, 0)).reshape(9, odim)
    w1r = w1r.astype(jnp.float32)
    b1r = params["b1"].reshape(1, odim).astype(jnp.float32)
    # W2 (o, c, kh, kw) -> rows ordered (kh, kw, c); bf16 MXU inputs.
    w2r = jnp.transpose(params["w2"], (2, 3, 1, 0)).reshape(9 * odim, odim)
    w2r = w2r.astype(jnp.bfloat16)
    b2r = params["b2"].reshape(1, odim).astype(jnp.float32)
    # PyTorch flattens conv output as (c, f); our rows are (f, t) with channel
    # lanes -> pre-split the Linear weight per f2 block: rows = f2*odim + c.
    wlr = jnp.transpose(params["wl"].reshape(odim, odim, f2), (2, 1, 0))
    wlr = wlr.reshape(f2 * odim, odim).astype(jnp.bfloat16)
    blr = params["bl"].reshape(1, odim).astype(jnp.float32)

    flops = 2 * B * (t1 * f1 * 9 * odim
                     + t2 * f2 * 9 * odim * odim
                     + t2 * f2 * odim * odim)
    bytes_accessed = (x4.size * 4 + w1r.size * 4 + w2r.size * 2 + wlr.size * 2
                      + (b1r.size + b2r.size + blr.size) * 4
                      + B * num_tiles * t2_tile * odim * 4)
    vmem_limit = int(min(64 * 2**20,
                         max(32 * 2**20,
                             3 * _vmem_estimate_bytes(t2_tile, f2, odim) // 2)))

    kernel = functools.partial(_fused_subsample_kernel,
                               t2_tile=t2_tile, f2=f2, odim=odim)
    j_len, i_len = f2 + 2, t2_tile + 2
    out_padded = pl.pallas_call(
        kernel,
        out_shape=jax.ShapeDtypeStruct((B, num_tiles * t2_tile, odim), jnp.float32),
        grid=(B, num_tiles),
        in_specs=[
            pl.BlockSpec((1, 1, 16, j_len, i_len), lambda b, n: (b, n, 0, 0, 0)),
            pl.BlockSpec((9, odim), lambda b, n: (0, 0)),
            pl.BlockSpec((1, odim), lambda b, n: (0, 0)),
            pl.BlockSpec((9 * odim, odim), lambda b, n: (0, 0)),
            pl.BlockSpec((1, odim), lambda b, n: (0, 0)),
            pl.BlockSpec((f2 * odim, odim), lambda b, n: (0, 0)),
            pl.BlockSpec((1, odim), lambda b, n: (0, 0)),
        ],
        out_specs=pl.BlockSpec((1, t2_tile, odim), lambda b, n: (b, n, 0)),
        compiler_params=pltpu.CompilerParams(
            dimension_semantics=("parallel", "parallel"),
            vmem_limit_bytes=vmem_limit),
        cost_estimate=pl.CostEstimate(flops=flops, transcendentals=0,
                                      bytes_accessed=bytes_accessed),
    )(x4, w1r, b1r, w2r, b2r, wlr, blr)

    out = out_padded[:, :t2, :]
    return out, get_out_seq_lens(x_length)


# ---------------------------- pure-JAX reference ---------------------------- #

def _reference(params, x):
    xr = x[:, None, :, :]                                # NCHW, C=1
    y = jax.lax.conv_general_dilated(
        xr, params["w1"], (2, 2), "VALID",
        dimension_numbers=("NCHW", "OIHW", "NCHW"))
    y = jnp.maximum(y + params["b1"][None, :, None, None], 0.0)
    y = jax.lax.conv_general_dilated(
        y, params["w2"], (2, 2), "VALID",
        dimension_numbers=("NCHW", "OIHW", "NCHW"))
    y = jnp.maximum(y + params["b2"][None, :, None, None], 0.0)
    b, c, t, f = y.shape
    y = jnp.transpose(y, (0, 2, 1, 3)).reshape(b, t, c * f)
    return y @ params["wl"].T + params["bl"]


# ---------------------------------- main ------------------------------------ #

if __name__ == "__main__":
    key = jax.random.PRNGKey(0)
    B, T, idim, odim = 2, 16, 16, 32
    F2 = (((idim - 1) // 2) - 1) // 2

    ks = jax.random.split(key, 7)
    scale = 0.1
    params = {
        "w1": scale * jax.random.normal(ks[0], (odim, 1, 3, 3), jnp.float32),
        "b1": scale * jax.random.normal(ks[1], (odim,), jnp.float32),
        "w2": scale * jax.random.normal(ks[2], (odim, odim, 3, 3), jnp.float32),
        "b2": scale * jax.random.normal(ks[3], (odim,), jnp.float32),
        "wl": scale * jax.random.normal(ks[4], (odim, odim * F2), jnp.float32),
        "bl": scale * jax.random.normal(ks[5], (odim,), jnp.float32),
    }
    x = jax.random.normal(ks[6], (B, T, idim), jnp.float32)
    x_length = jnp.array([16, 11], dtype=jnp.int32)

    out, out_lens = conv2d_subsampling4_forward(params, x, x_length)
    out = jax.block_until_ready(out)
    out_lens = jax.block_until_ready(out_lens)

    ref = _reference(params, x)
    assert out.shape == ref.shape, (out.shape, ref.shape)
    # bf16 matmul inputs with f32 accumulation -> loose-but-tight-enough bound.
    assert float(jnp.max(jnp.abs(out - ref))) < 5e-2
    assert out_lens.tolist() == [4, 3]

    print("KERNEL_OK")
</pallas_src>

<mosaic_0001>
module attributes {stable_mosaic.version = 11 : i64} {
  func.func @_fused_subsample_kernel(%arg0: i32, %arg1: i32, %arg2: memref<1x1x16x5x10xf32, #tpu.memory_space<vmem>>, %arg3: memref<9x32xf32, #tpu.memory_space<vmem>>, %arg4: memref<1x32xf32, #tpu.memory_space<vmem>>, %arg5: memref<288x32xbf16, #tpu.memory_space<vmem>>, %arg6: memref<1x32xf32, #tpu.memory_space<vmem>>, %arg7: memref<96x32xbf16, #tpu.memory_space<vmem>>, %arg8: memref<1x32xf32, #tpu.memory_space<vmem>>, %arg9: memref<1x8x32xf32, #tpu.memory_space<vmem>>) attributes {dimension_semantics = [#tpu.dimension_semantics<parallel>, #tpu.dimension_semantics<parallel>], iteration_bounds = array<i64: 2, 1>, scalar_prefetch = 0 : i64, scratch_operands = 0 : i64, tpu.core_type = #tpu.core_type<tc>, window_params = [{transform_indices = @transform_0, window_bounds = array<i64: 1, 1, 16, 5, 10>}, {pipeline_mode = #tpu.pipeline_mode<synchronous>, transform_indices = @transform_1, window_bounds = array<i64: 9, 32>}, {pipeline_mode = #tpu.pipeline_mode<synchronous>, transform_indices = @transform_2, window_bounds = array<i64: 1, 32>}, {pipeline_mode = #tpu.pipeline_mode<synchronous>, transform_indices = @transform_3, window_bounds = array<i64: 288, 32>}, {pipeline_mode = #tpu.pipeline_mode<synchronous>, transform_indices = @transform_4, window_bounds = array<i64: 1, 32>}, {pipeline_mode = #tpu.pipeline_mode<synchronous>, transform_indices = @transform_5, window_bounds = array<i64: 96, 32>}, {pipeline_mode = #tpu.pipeline_mode<synchronous>, transform_indices = @transform_6, window_bounds = array<i64: 1, 32>}, {transform_indices = @transform_7, window_bounds = array<i64: 1, 8, 32>}]} {
    %c0 = arith.constant 0 : index
    %c0_0 = arith.constant 0 : index
    %c0_1 = arith.constant 0 : index
    %c0_2 = arith.constant 0 : index
    %c0_3 = arith.constant 0 : index
    %0 = vector.load %arg2[%c0, %c0_0, %c0_1, %c0_2, %c0_3] : memref<1x1x16x5x10xf32, #tpu.memory_space<vmem>>, vector<1x1x16x5x10xf32>
    %1 = vector.shape_cast %0 : vector<1x1x16x5x10xf32> to vector<16x5x10xf32>
    %c0_4 = arith.constant 0 : index
    %c0_5 = arith.constant 0 : index
    %2 = vector.load %arg4[%c0_4, %c0_5] : memref<1x32xf32, #tpu.memory_space<vmem>>, vector<1x32xf32>
    %cst = arith.constant 0.000000e+00 : f32
    %3 = vector.broadcast %cst : f32 to vector<4x9x32xf32>
    %4 = vector.extract_strided_slice %1 {offsets = [0, 0, 0], sizes = [1, 4, 9], strides = [1, 1, 1]} : vector<16x5x10xf32> to vector<1x4x9xf32>
    %5 = vector.shape_cast %4 : vector<1x4x9xf32> to vector<4x9xf32>
    %c0_6 = arith.constant 0 : index
    %c0_7 = arith.constant 0 : index
    %6 = vector.load %arg3[%c0_6, %c0_7] : memref<9x32xf32, #tpu.memory_space<vmem>>, vector<1x32xf32>
    %7 = vector.shape_cast %5 : vector<4x9xf32> to vector<4x9x1xf32>
    %8 = vector.shape_cast %6 : vector<1x32xf32> to vector<1x1x32xf32>
    %9 = vector.broadcast %7 : vector<4x9x1xf32> to vector<4x9x32xf32>
    %10 = vector.broadcast %8 : vector<1x1x32xf32> to vector<4x9x32xf32>
    %11 = arith.mulf %9, %10 : vector<4x9x32xf32>
    %12 = arith.addf %3, %11 : vector<4x9x32xf32>
    %13 = vector.extract_strided_slice %1 {offsets = [1, 0, 0], sizes = [1, 4, 9], strides = [1, 1, 1]} : vector<16x5x10xf32> to vector<1x4x9xf32>
    %14 = vector.shape_cast %13 : vector<1x4x9xf32> to vector<4x9xf32>
    %c1 = arith.constant 1 : index
    %c0_8 = arith.constant 0 : index
    %15 = vector.load %arg3[%c1, %c0_8] : memref<9x32xf32, #tpu.memory_space<vmem>>, vector<1x32xf32>
    %16 = vector.shape_cast %14 : vector<4x9xf32> to vector<4x9x1xf32>
    %17 = vector.shape_cast %15 : vector<1x32xf32> to vector<1x1x32xf32>
    %18 = vector.broadcast %16 : vector<4x9x1xf32> to vector<4x9x32xf32>
    %19 = vector.broadcast %17 : vector<1x1x32xf32> to vector<4x9x32xf32>
    %20 = arith.mulf %18, %19 : vector<4x9x32xf32>
    %21 = arith.addf %12, %20 : vector<4x9x32xf32>
    %22 = vector.extract_strided_slice %1 {offsets = [2, 0, 0], sizes = [1, 4, 9], strides = [1, 1, 1]} : vector<16x5x10xf32> to vector<1x4x9xf32>
    %23 = vector.shape_cast %22 : vector<1x4x9xf32> to vector<4x9xf32>
    %c2 = arith.constant 2 : index
    %c0_9 = arith.constant 0 : index
    %24 = vector.load %arg3[%c2, %c0_9] : memref<9x32xf32, #tpu.memory_space<vmem>>, vector<1x32xf32>
    %25 = vector.shape_cast %23 : vector<4x9xf32> to vector<4x9x1xf32>
    %26 = vector.shape_cast %24 : vector<1x32xf32> to vector<1x1x32xf32>
    %27 = vector.broadcast %25 : vector<4x9x1xf32> to vector<4x9x32xf32>
    %28 = vector.broadcast %26 : vector<1x1x32xf32> to vector<4x9x32xf32>
    %29 = arith.mulf %27, %28 : vector<4x9x32xf32>
    %30 = arith.addf %21, %29 : vector<4x9x32xf32>
    %31 = vector.extract_strided_slice %1 {offsets = [4, 0, 0], sizes = [1, 4, 9], strides = [1, 1, 1]} : vector<16x5x10xf32> to vector<1x4x9xf32>
    %32 = vector.shape_cast %31 : vector<1x4x9xf32> to vector<4x9xf32>
    %c3 = arith.constant 3 : index
    %c0_10 = arith.constant 0 : index
    %33 = vector.load %arg3[%c3, %c0_10] : memref<9x32xf32, #tpu.memory_space<vmem>>, vector<1x32xf32>
    %34 = vector.shape_cast %32 : vector<4x9xf32> to vector<4x9x1xf32>
    %35 = vector.shape_cast %33 : vector<1x32xf32> to vector<1x1x32xf32>
    %36 = vector.broadcast %34 : vector<4x9x1xf32> to vector<4x9x32xf32>
    %37 = vector.broadcast %35 : vector<1x1x32xf32> to vector<4x9x32xf32>
    %38 = arith.mulf %36, %37 : vector<4x9x32xf32>
    %39 = arith.addf %30, %38 : vector<4x9x32xf32>
    %40 = vector.extract_strided_slice %1 {offsets = [5, 0, 0], sizes = [1, 4, 9], strides = [1, 1, 1]} : vector<16x5x10xf32> to vector<1x4x9xf32>
    %41 = vector.shape_cast %40 : vector<1x4x9xf32> to vector<4x9xf32>
    %c4 = arith.constant 4 : index
    %c0_11 = arith.constant 0 : index
    %42 = vector.load %arg3[%c4, %c0_11] : memref<9x32xf32, #tpu.memory_space<vmem>>, vector<1x32xf32>
    %43 = vector.shape_cast %41 : vector<4x9xf32> to vector<4x9x1xf32>
    %44 = vector.shape_cast %42 : vector<1x32xf32> to vector<1x1x32xf32>
    %45 = vector.broadcast %43 : vector<4x9x1xf32> to vector<4x9x32xf32>
    %46 = vector.broadcast %44 : vector<1x1x32xf32> to vector<4x9x32xf32>
    %47 = arith.mulf %45, %46 : vector<4x9x32xf32>
    %48 = arith.addf %39, %47 : vector<4x9x32xf32>
    %49 = vector.extract_strided_slice %1 {offsets = [6, 0, 0], sizes = [1, 4, 9], strides = [1, 1, 1]} : vector<16x5x10xf32> to vector<1x4x9xf32>
    %50 = vector.shape_cast %49 : vector<1x4x9xf32> to vector<4x9xf32>
    %c5 = arith.constant 5 : index
    %c0_12 = arith.constant 0 : index
    %51 = vector.load %arg3[%c5, %c0_12] : memref<9x32xf32, #tpu.memory_space<vmem>>, vector<1x32xf32>
    %52 = vector.shape_cast %50 : vector<4x9xf32> to vector<4x9x1xf32>
    %53 = vector.shape_cast %51 : vector<1x32xf32> to vector<1x1x32xf32>
    %54 = vector.broadcast %52 : vector<4x9x1xf32> to vector<4x9x32xf32>
    %55 = vector.broadcast %53 : vector<1x1x32xf32> to vector<4x9x32xf32>
    %56 = arith.mulf %54, %55 : vector<4x9x32xf32>
    %57 = arith.addf %48, %56 : vector<4x9x32xf32>
    %58 = vector.extract_strided_slice %1 {offsets = [8, 0, 0], sizes = [1, 4, 9], strides = [1, 1, 1]} : vector<16x5x10xf32> to vector<1x4x9xf32>
    %59 = vector.shape_cast %58 : vector<1x4x9xf32> to vector<4x9xf32>
    %c6 = arith.constant 6 : index
    %c0_13 = arith.constant 0 : index
    %60 = vector.load %arg3[%c6, %c0_13] : memref<9x32xf32, #tpu.memory_space<vmem>>, vector<1x32xf32>
    %61 = vector.shape_cast %59 : vector<4x9xf32> to vector<4x9x1xf32>
    %62 = vector.shape_cast %60 : vector<1x32xf32> to vector<1x1x32xf32>
    %63 = vector.broadcast %61 : vector<4x9x1xf32> to vector<4x9x32xf32>
    %64 = vector.broadcast %62 : vector<1x1x32xf32> to vector<4x9x32xf32>
    %65 = arith.mulf %63, %64 : vector<4x9x32xf32>
    %66 = arith.addf %57, %65 : vector<4x9x32xf32>
    %67 = vector.extract_strided_slice %1 {offsets = [9, 0, 0], sizes = [1, 4, 9], strides = [1, 1, 1]} : vector<16x5x10xf32> to vector<1x4x9xf32>
    %68 = vector.shape_cast %67 : vector<1x4x9xf32> to vector<4x9xf32>
    %c7 = arith.constant 7 : index
    %c0_14 = arith.constant 0 : index
    %69 = vector.load %arg3[%c7, %c0_14] : memref<9x32xf32, #tpu.memory_space<vmem>>, vector<1x32xf32>
    %70 = vector.shape_cast %68 : vector<4x9xf32> to vector<4x9x1xf32>
    %71 = vector.shape_cast %69 : vector<1x32xf32> to vector<1x1x32xf32>
    %72 = vector.broadcast %70 : vector<4x9x1xf32> to vector<4x9x32xf32>
    %73 = vector.broadcast %71 : vector<1x1x32xf32> to vector<4x9x32xf32>
    %74 = arith.mulf %72, %73 : vector<4x9x32xf32>
    %75 = arith.addf %66, %74 : vector<4x9x32xf32>
    %76 = vector.extract_strided_slice %1 {offsets = [10, 0, 0], sizes = [1, 4, 9], strides = [1, 1, 1]} : vector<16x5x10xf32> to vector<1x4x9xf32>
    %77 = vector.shape_cast %76 : vector<1x4x9xf32> to vector<4x9xf32>
    %c8 = arith.constant 8 : index
    %c0_15 = arith.constant 0 : index
    %78 = vector.load %arg3[%c8, %c0_15] : memref<9x32xf32, #tpu.memory_space<vmem>>, vector<1x32xf32>
    %79 = vector.shape_cast %77 : vector<4x9xf32> to vector<4x9x1xf32>
    %80 = vector.shape_cast %78 : vector<1x32xf32> to vector<1x1x32xf32>
    %81 = vector.broadcast %79 : vector<4x9x1xf32> to vector<4x9x32xf32>
    %82 = vector.broadcast %80 : vector<1x1x32xf32> to vector<4x9x32xf32>
    %83 = arith.mulf %81, %82 : vector<4x9x32xf32>
    %84 = arith.addf %75, %83 : vector<4x9x32xf32>
    %85 = vector.shape_cast %2 : vector<1x32xf32> to vector<1x1x32xf32>
    %86 = vector.broadcast %85 : vector<1x1x32xf32> to vector<4x9x32xf32>
    %87 = arith.addf %84, %86 : vector<4x9x32xf32>
    %cst_16 = arith.constant 0.000000e+00 : f32
    %88 = vector.broadcast %cst_16 : f32 to vector<4x9x32xf32>
    %89 = arith.maximumf %87, %88 : vector<4x9x32xf32>
    %90 = arith.truncf %89 : vector<4x9x32xf32> to vector<4x9x32xbf16>
    %cst_17 = arith.constant 0.000000e+00 : f32
    %91 = vector.broadcast %cst_17 : f32 to vector<4x9x32xf32>
    %92 = vector.extract_strided_slice %1 {offsets = [2, 0, 0], sizes = [1, 4, 9], strides = [1, 1, 1]} : vector<16x5x10xf32> to vector<1x4x9xf32>
    %93 = vector.shape_cast %92 : vector<1x4x9xf32> to vector<4x9xf32>
    %c0_18 = arith.constant 0 : index
    %c0_19 = arith.constant 0 : index
    %94 = vector.load %arg3[%c0_18, %c0_19] : memref<9x32xf32, #tpu.memory_space<vmem>>, vector<1x32xf32>
    %95 = vector.shape_cast %93 : vector<4x9xf32> to vector<4x9x1xf32>
    %96 = vector.shape_cast %94 : vector<1x32xf32> to vector<1x1x32xf32>
    %97 = vector.broadcast %95 : vector<4x9x1xf32> to vector<4x9x32xf32>
    %98 = vector.broadcast %96 : vector<1x1x32xf32> to vector<4x9x32xf32>
    %99 = arith.mulf %97, %98 : vector<4x9x32xf32>
    %100 = arith.addf %91, %99 : vector<4x9x32xf32>
    %101 = vector.extract_strided_slice %1 {offsets = [3, 0, 0], sizes = [1, 4, 9], strides = [1, 1, 1]} : vector<16x5x10xf32> to vector<1x4x9xf32>
    %102 = vector.shape_cast %101 : vector<1x4x9xf32> to vector<4x9xf32>
    %c1_20 = arith.constant 1 : index
    %c0_21 = arith.constant 0 : index
    %103 = vector.load %arg3[%c1_20, %c0_21] : memref<9x32xf32, #tpu.memory_space<vmem>>, vector<1x32xf32>
    %104 = vector.shape_cast %102 : vector<4x9xf32> to vector<4x9x1xf32>
    %105 = vector.shape_cast %103 : vector<1x32xf32> to vector<1x1x32xf32>
    %106 = vector.broadcast %104 : vector<4x9x1xf32> to vector<4x9x32xf32>
    %107 = vector.broadcast %105 : vector<1x1x32xf32> to vector<4x9x32xf32>
    %108 = arith.mulf %106, %107 : vector<4x9x32xf32>
    %109 = arith.addf %100, %108 : vector<4x9x32xf32>
    %110 = vector.extract_strided_slice %1 {offsets = [0, 1, 0], sizes = [1, 4, 9], strides = [1, 1, 1]} : vector<16x5x10xf32> to vector<1x4x9xf32>
    %111 = vector.shape_cast %110 : vector<1x4x9xf32> to vector<4x9xf32>
    %c2_22 = arith.constant 2 : index
    %c0_23 = arith.constant 0 : index
    %112 = vector.load %arg3[%c2_22, %c0_23] : memref<9x32xf32, #tpu.memory_space<vmem>>, vector<1x32xf32>
    %113 = vector.shape_cast %111 : vector<4x9xf32> to vector<4x9x1xf32>
    %114 = vector.shape_cast %112 : vector<1x32xf32> to vector<1x1x32xf32>
    %115 = vector.broadcast %113 : vector<4x9x1xf32> to vector<4x9x32xf32>
    %116 = vector.broadcast %114 : vector<1x1x32xf32> to vector<4x9x32xf32>
    %117 = arith.mulf %115, %116 : vector<4x9x32xf32>
    %118 = arith.addf %109, %117 : vector<4x9x32xf32>
    %119 = vector.extract_strided_slice %1 {offsets = [6, 0, 0], sizes = [1, 4, 9], strides = [1, 1, 1]} : vector<16x5x10xf32> to vector<1x4x9xf32>
    %120 = vector.shape_cast %119 : vector<1x4x9xf32> to vector<4x9xf32>
    %c3_24 = arith.constant 3 : index
    %c0_25 = arith.constant 0 : index
    %121 = vector.load %arg3[%c3_24, %c0_25] : memref<9x32xf32, #tpu.memory_space<vmem>>, vector<1x32xf32>
    %122 = vector.shape_cast %120 : vector<4x9xf32> to vector<4x9x1xf32>
    %123 = vector.shape_cast %121 : vector<1x32xf32> to vector<1x1x32xf32>
    %124 = vector.broadcast %122 : vector<4x9x1xf32> to vector<4x9x32xf32>
    %125 = vector.broadcast %123 : vector<1x1x32xf32> to vector<4x9x32xf32>
    %126 = arith.mulf %124, %125 : vector<4x9x32xf32>
    %127 = arith.addf %118, %126 : vector<4x9x32xf32>
    %128 = vector.extract_strided_slice %1 {offsets = [7, 0, 0], sizes = [1, 4, 9], strides = [1, 1, 1]} : vector<16x5x10xf32> to vector<1x4x9xf32>
    %129 = vector.shape_cast %128 : vector<1x4x9xf32> to vector<4x9xf32>
    %c4_26 = arith.constant 4 : index
    %c0_27 = arith.constant 0 : index
    %130 = vector.load %arg3[%c4_26, %c0_27] : memref<9x32xf32, #tpu.memory_space<vmem>>, vector<1x32xf32>
    %131 = vector.shape_cast %129 : vector<4x9xf32> to vector<4x9x1xf32>
    %132 = vector.shape_cast %130 : vector<1x32xf32> to vector<1x1x32xf32>
    %133 = vector.broadcast %131 : vector<4x9x1xf32> to vector<4x9x32xf32>
    %134 = vector.broadcast %132 : vector<1x1x32xf32> to vector<4x9x32xf32>
    %135 = arith.mulf %133, %134 : vector<4x9x32xf32>
    %136 = arith.addf %127, %135 : vector<4x9x32xf32>
    %137 = vector.extract_strided_slice %1 {offsets = [4, 1, 0], sizes = [1, 4, 9], strides = [1, 1, 1]} : vector<16x5x10xf32> to vector<1x4x9xf32>
    %138 = vector.shape_cast %137 : vector<1x4x9xf32> to vector<4x9xf32>
    %c5_28 = arith.constant 5 : index
    %c0_29 = arith.constant 0 : index
    %139 = vector.load %arg3[%c5_28, %c0_29] : memref<9x32xf32, #tpu.memory_space<vmem>>, vector<1x32xf32>
    %140 = vector.shape_cast %138 : vector<4x9xf32> to vector<4x9x1xf32>
    %141 = vector.shape_cast %139 : vector<1x32xf32> to vector<1x1x32xf32>
    %142 = vector.broadcast %140 : vector<4x9x1xf32> to vector<4x9x32xf32>
    %143 = vector.broadcast %141 : vector<1x1x32xf32> to vector<4x9x32xf32>
    %144 = arith.mulf %142, %143 : vector<4x9x32xf32>
    %145 = arith.addf %136, %144 : vector<4x9x32xf32>
    %146 = vector.extract_strided_slice %1 {offsets = [10, 0, 0], sizes = [1, 4, 9], strides = [1, 1, 1]} : vector<16x5x10xf32> to vector<1x4x9xf32>
    %147 = vector.shape_cast %146 : vector<1x4x9xf32> to vector<4x9xf32>
    %c6_30 = arith.constant 6 : index
    %c0_31 = arith.constant 0 : index
    %148 = vector.load %arg3[%c6_30, %c0_31] : memref<9x32xf32, #tpu.memory_space<vmem>>, vector<1x32xf32>
    %149 = vector.shape_cast %147 : vector<4x9xf32> to vector<4x9x1xf32>
    %150 = vector.shape_cast %148 : vector<1x32xf32> to vector<1x1x32xf32>
    %151 = vector.broadcast %149 : vector<4x9x1xf32> to vector<4x9x32xf32>
    %152 = vector.broadcast %150 : vector<1x1x32xf32> to vector<4x9x32xf32>
    %153 = arith.mulf %151, %152 : vector<4x9x32xf32>
    %154 = arith.addf %145, %153 : vector<4x9x32xf32>
    %155 = vector.extract_strided_slice %1 {offsets = [11, 0, 0], sizes = [1, 4, 9], strides = [1, 1, 1]} : vector<16x5x10xf32> to vector<1x4x9xf32>
    %156 = vector.shape_cast %155 : vector<1x4x9xf32> to vector<4x9xf32>
    %c7_32 = arith.constant 7 : index
    %c0_33 = arith.constant 0 : index
    %157 = vector.load %arg3[%c7_32, %c0_33] : memref<9x32xf32, #tpu.memory_space<vmem>>, vector<1x32xf32>
    %158 = vector.shape_cast %156 : vector<4x9xf32> to vector<4x9x1xf32>
    %159 = vector.shape_cast %157 : vector<1x32xf32> to vector<1x1x32xf32>
    %160 = vector.broadcast %158 : vector<4x9x1xf32> to vector<4x9x32xf32>
    %161 = vector.broadcast %159 : vector<1x1x32xf32> to vector<4x9x32xf32>
    %162 = arith.mulf %160, %161 : vector<4x9x32xf32>
    %163 = arith.addf %154, %162 : vector<4x9x32xf32>
    %164 = vector.extract_strided_slice %1 {offsets = [8, 1, 0], sizes = [1, 4, 9], strides = [1, 1, 1]} : vector<16x5x10xf32> to vector<1x4x9xf32>
    %165 = vector.shape_cast %164 : vector<1x4x9xf32> to vector<4x9xf32>
    %c8_34 = arith.constant 8 : index
    %c0_35 = arith.constant 0 : index
    %166 = vector.load %arg3[%c8_34, %c0_35] : memref<9x32xf32, #tpu.memory_space<vmem>>, vector<1x32xf32>
    %167 = vector.shape_cast %165 : vector<4x9xf32> to vector<4x9x1xf32>
    %168 = vector.shape_cast %166 : vector<1x32xf32> to vector<1x1x32xf32>
    %169 = vector.broadcast %167 : vector<4x9x1xf32> to vector<4x9x32xf32>
    %170 = vector.broadcast %168 : vector<1x1x32xf32> to vector<4x9x32xf32>
    %171 = arith.mulf %169, %170 : vector<4x9x32xf32>
    %172 = arith.addf %163, %171 : vector<4x9x32xf32>
    %173 = vector.shape_cast %2 : vector<1x32xf32> to vector<1x1x32xf32>
    %174 = vector.broadcast %173 : vector<1x1x32xf32> to vector<4x9x32xf32>
    %175 = arith.addf %172, %174 : vector<4x9x32xf32>
    %cst_36 = arith.constant 0.000000e+00 : f32
    %176 = vector.broadcast %cst_36 : f32 to vector<4x9x32xf32>
    %177 = arith.maximumf %175, %176 : vector<4x9x32xf32>
    %178 = arith.truncf %177 : vector<4x9x32xf32> to vector<4x9x32xbf16>
    %cst_37 = arith.constant 0.000000e+00 : f32
    %179 = vector.broadcast %cst_37 : f32 to vector<4x9x32xf32>
    %180 = vector.extract_strided_slice %1 {offsets = [8, 0, 0], sizes = [1, 4, 9], strides = [1, 1, 1]} : vector<16x5x10xf32> to vector<1x4x9xf32>
    %181 = vector.shape_cast %180 : vector<1x4x9xf32> to vector<4x9xf32>
    %c0_38 = arith.constant 0 : index
    %c0_39 = arith.constant 0 : index
    %182 = vector.load %arg3[%c0_38, %c0_39] : memref<9x32xf32, #tpu.memory_space<vmem>>, vector<1x32xf32>
    %183 = vector.shape_cast %181 : vector<4x9xf32> to vector<4x9x1xf32>
    %184 = vector.shape_cast %182 : vector<1x32xf32> to vector<1x1x32xf32>
    %185 = vector.broadcast %183 : vector<4x9x1xf32> to vector<4x9x32xf32>
    %186 = vector.broadcast %184 : vector<1x1x32xf32> to vector<4x9x32xf32>
    %187 = arith.mulf %185, %186 : vector<4x9x32xf32>
    %188 = arith.addf %179, %187 : vector<4x9x32xf32>
    %189 = vector.extract_strided_slice %1 {offsets = [9, 0, 0], sizes = [1, 4, 9], strides = [1, 1, 1]} : vector<16x5x10xf32> to vector<1x4x9xf32>
    %190 = vector.shape_cast %189 : vector<1x4x9xf32> to vector<4x9xf32>
    %c1_40 = arith.constant 1 : index
    %c0_41 = arith.constant 0 : index
    %191 = vector.load %arg3[%c1_40, %c0_41] : memref<9x32xf32, #tpu.memory_space<vmem>>, vector<1x32xf32>
    %192 = vector.shape_cast %190 : vector<4x9xf32> to vector<4x9x1xf32>
    %193 = vector.shape_cast %191 : vector<1x32xf32> to vector<1x1x32xf32>
    %194 = vector.broadcast %192 : vector<4x9x1xf32> to vector<4x9x32xf32>
    %195 = vector.broadcast %193 : vector<1x1x32xf32> to vector<4x9x32xf32>
    %196 = arith.mulf %194, %195 : vector<4x9x32xf32>
    %197 = arith.addf %188, %196 : vector<4x9x32xf32>
    %198 = vector.extract_strided_slice %1 {offsets = [10, 0, 0], sizes = [1, 4, 9], strides = [1, 1, 1]} : vector<16x5x10xf32> to vector<1x4x9xf32>
    %199 = vector.shape_cast %198 : vector<1x4x9xf32> to vector<4x9xf32>
    %c2_42 = arith.constant 2 : index
    %c0_43 = arith.constant 0 : index
    %200 = vector.load %arg3[%c2_42, %c0_43] : memref<9x32xf32, #tpu.memory_space<vmem>>, vector<1x32xf32>
    %201 = vector.shape_cast %199 : vector<4x9xf32> to vector<4x9x1xf32>
    %202 = vector.shape_cast %200 : vector<1x32xf32> to vector<1x1x32xf32>
    %203 = vector.broadcast %201 : vector<4x9x1xf32> to vector<4x9x32xf32>
    %204 = vector.broadcast %202 : vector<1x1x32xf32> to vector<4x9x32xf32>
    %205 = arith.mulf %203, %204 : vector<4x9x32xf32>
    %206 = arith.addf %197, %205 : vector<4x9x32xf32>
    %207 = vector.extract_strided_slice %1 {offsets = [12, 0, 0], sizes = [1, 4, 9], strides = [1, 1, 1]} : vector<16x5x10xf32> to vector<1x4x9xf32>
    %208 = vector.shape_cast %207 : vector<1x4x9xf32> to vector<4x9xf32>
    %c3_44 = arith.constant 3 : index
    %c0_45 = arith.constant 0 : index
    %209 = vector.load %arg3[%c3_44, %c0_45] : memref<9x32xf32, #tpu.memory_space<vmem>>, vector<1x32xf32>
    %210 = vector.shape_cast %208 : vector<4x9xf32> to vector<4x9x1xf32>
    %211 = vector.shape_cast %209 : vector<1x32xf32> to vector<1x1x32xf32>
    %212 = vector.broadcast %210 : vector<4x9x1xf32> to vector<4x9x32xf32>
    %213 = vector.broadcast %211 : vector<1x1x32xf32> to vector<4x9x32xf32>
    %214 = arith.mulf %212, %213 : vector<4x9x32xf32>
    %215 = arith.addf %206, %214 : vector<4x9x32xf32>
    %216 = vector.extract_strided_slice %1 {offsets = [13, 0, 0], sizes = [1, 4, 9], strides = [1, 1, 1]} : vector<16x5x10xf32> to vector<1x4x9xf32>
    %217 = vector.shape_cast %216 : vector<1x4x9xf32> to vector<4x9xf32>
    %c4_46 = arith.constant 4 : index
    %c0_47 = arith.constant 0 : index
    %218 = vector.load %arg3[%c4_46, %c0_47] : memref<9x32xf32, #tpu.memory_space<vmem>>, vector<1x32xf32>
    %219 = vector.shape_cast %217 : vector<4x9xf32> to vector<4x9x1xf32>
    %220 = vector.shape_cast %218 : vector<1x32xf32> to vector<1x1x32xf32>
    %221 = vector.broadcast %219 : vector<4x9x1xf32> to vector<4x9x32xf32>
    %222 = vector.broadcast %220 : vector<1x1x32xf32> to vector<4x9x32xf32>
    %223 = arith.mulf %221, %222 : vector<4x9x32xf32>
    %224 = arith.addf %215, %223 : vector<4x9x32xf32>
    %225 = vector.extract_strided_slice %1 {offsets = [14, 0, 0], sizes = [1, 4, 9], strides = [1, 1, 1]} : vector<16x5x10xf32> to vector<1x4x9xf32>
    %226 = vector.shape_cast %225 : vector<1x4x9xf32> to vector<4x9xf32>
    %c5_48 = arith.constant 5 : index
    %c0_49 = arith.constant 0 : index
    %227 = vector.load %arg3[%c5_48, %c0_49] : memref<9x32xf32, #tpu.memory_space<vmem>>, vector<1x32xf32>
    %228 = vector.shape_cast %226 : vector<4x9xf32> to vector<4x9x1xf32>
    %229 = vector.shape_cast %227 : vector<1x32xf32> to vector<1x1x32xf32>
    %230 = vector.broadcast %228 : vector<4x9x1xf32> to vector<4x9x32xf32>
    %231 = vector.broadcast %229 : vector<1x1x32xf32> to vector<4x9x32xf32>
    %232 = arith.mulf %230, %231 : vector<4x9x32xf32>
    %233 = arith.addf %224, %232 : vector<4x9x32xf32>
    %234 = vector.extract_strided_slice %1 {offsets = [0, 0, 1], sizes = [1, 4, 9], strides = [1, 1, 1]} : vector<16x5x10xf32> to vector<1x4x9xf32>
    %235 = vector.shape_cast %234 : vector<1x4x9xf32> to vector<4x9xf32>
    %c6_50 = arith.constant 6 : index
    %c0_51 = arith.constant 0 : index
    %236 = vector.load %arg3[%c6_50, %c0_51] : memref<9x32xf32, #tpu.memory_space<vmem>>, vector<1x32xf32>
    %237 = vector.shape_cast %235 : vector<4x9xf32> to vector<4x9x1xf32>
    %238 = vector.shape_cast %236 : vector<1x32xf32> to vector<1x1x32xf32>
    %239 = vector.broadcast %237 : vector<4x9x1xf32> to vector<4x9x32xf32>
    %240 = vector.broadcast %238 : vector<1x1x32xf32> to vector<4x9x32xf32>
    %241 = arith.mulf %239, %240 : vector<4x9x32xf32>
    %242 = arith.addf %233, %241 : vector<4x9x32xf32>
    %243 = vector.extract_strided_slice %1 {offsets = [1, 0, 1], sizes = [1, 4, 9], strides = [1, 1, 1]} : vector<16x5x10xf32> to vector<1x4x9xf32>
    %244 = vector.shape_cast %243 : vector<1x4x9xf32> to vector<4x9xf32>
    %c7_52 = arith.constant 7 : index
    %c0_53 = arith.constant 0 : index
    %245 = vector.load %arg3[%c7_52, %c0_53] : memref<9x32xf32, #tpu.memory_space<vmem>>, vector<1x32xf32>
    %246 = vector.shape_cast %244 : vector<4x9xf32> to vector<4x9x1xf32>
    %247 = vector.shape_cast %245 : vector<1x32xf32> to vector<1x1x32xf32>
    %248 = vector.broadcast %246 : vector<4x9x1xf32> to vector<4x9x32xf32>
    %249 = vector.broadcast %247 : vector<1x1x32xf32> to vector<4x9x32xf32>
    %250 = arith.mulf %248, %249 : vector<4x9x32xf32>
    %251 = arith.addf %242, %250 : vector<4x9x32xf32>
    %252 = vector.extract_strided_slice %1 {offsets = [2, 0, 1], sizes = [1, 4, 9], strides = [1, 1, 1]} : vector<16x5x10xf32> to vector<1x4x9xf32>
    %253 = vector.shape_cast %252 : vector<1x4x9xf32> to vector<4x9xf32>
    %c8_54 = arith.constant 8 : index
    %c0_55 = arith.constant 0 : index
    %254 = vector.load %arg3[%c8_54, %c0_55] : memref<9x32xf32, #tpu.memory_space<vmem>>, vector<1x32xf32>
    %255 = vector.shape_cast %253 : vector<4x9xf32> to vector<4x9x1xf32>
    %256 = vector.shape_cast %254 : vector<1x32xf32> to vector<1x1x32xf32>
    %257 = vector.broadcast %255 : vector<4x9x1xf32> to vector<4x9x32xf32>
    %258 = vector.broadcast %256 : vector<1x1x32xf32> to vector<4x9x32xf32>
    %259 = arith.mulf %257, %258 : vector<4x9x32xf32>
    %260 = arith.addf %251, %259 : vector<4x9x32xf32>
    %261 = vector.shape_cast %2 : vector<1x32xf32> to vector<1x1x32xf32>
    %262 = vector.broadcast %261 : vector<1x1x32xf32> to vector<4x9x32xf32>
    %263 = arith.addf %260, %262 : vector<4x9x32xf32>
    %cst_56 = arith.constant 0.000000e+00 : f32
    %264 = vector.broadcast %cst_56 : f32 to vector<4x9x32xf32>
    %265 = arith.maximumf %263, %264 : vector<4x9x32xf32>
    %266 = arith.truncf %265 : vector<4x9x32xf32> to vector<4x9x32xbf16>
    %cst_57 = arith.constant 0.000000e+00 : f32
    %267 = vector.broadcast %cst_57 : f32 to vector<4x9x32xf32>
    %268 = vector.extract_strided_slice %1 {offsets = [10, 0, 0], sizes = [1, 4, 9], strides = [1, 1, 1]} : vector<16x5x10xf32> to vector<1x4x9xf32>
    %269 = vector.shape_cast %268 : vector<1x4x9xf32> to vector<4x9xf32>
    %c0_58 = arith.constant 0 : index
    %c0_59 = arith.constant 0 : index
    %270 = vector.load %arg3[%c0_58, %c0_59] : memref<9x32xf32, #tpu.memory_space<vmem>>, vector<1x32xf32>
    %271 = vector.shape_cast %269 : vector<4x9xf32> to vector<4x9x1xf32>
    %272 = vector.shape_cast %270 : vector<1x32xf32> to vector<1x1x32xf32>
    %273 = vector.broadcast %271 : vector<4x9x1xf32> to vector<4x9x32xf32>
    %274 = vector.broadcast %272 : vector<1x1x32xf32> to vector<4x9x32xf32>
    %275 = arith.mulf %273, %274 : vector<4x9x32xf32>
    %276 = arith.addf %267, %275 : vector<4x9x32xf32>
    %277 = vector.extract_strided_slice %1 {offsets = [11, 0, 0], sizes = [1, 4, 9], strides = [1, 1, 1]} : vector<16x5x10xf32> to vector<1x4x9xf32>
    %278 = vector.shape_cast %277 : vector<1x4x9xf32> to vector<4x9xf32>
    %c1_60 = arith.constant 1 : index
    %c0_61 = arith.constant 0 : index
    %279 = vector.load %arg3[%c1_60, %c0_61] : memref<9x32xf32, #tpu.memory_space<vmem>>, vector<1x32xf32>
    %280 = vector.shape_cast %278 : vector<4x9xf32> to vector<4x9x1xf32>
    %281 = vector.shape_cast %279 : vector<1x32xf32> to vector<1x1x32xf32>
    %282 = vector.broadcast %280 : vector<4x9x1xf32> to vector<4x9x32xf32>
    %283 = vector.broadcast %281 : vector<1x1x32xf32> to vector<4x9x32xf32>
    %284 = arith.mulf %282, %283 : vector<4x9x32xf32>
    %285 = arith.addf %276, %284 : vector<4x9x32xf32>
    %286 = vector.extract_strided_slice %1 {offsets = [8, 1, 0], sizes = [1, 4, 9], strides = [1, 1, 1]} : vector<16x5x10xf32> to vector<1x4x9xf32>
    %287 = vector.shape_cast %286 : vector<1x4x9xf32> to vector<4x9xf32>
    %c2_62 = arith.constant 2 : index
    %c0_63 = arith.constant 0 : index
    %288 = vector.load %arg3[%c2_62, %c0_63] : memref<9x32xf32, #tpu.memory_space<vmem>>, vector<1x32xf32>
    %289 = vector.shape_cast %287 : vector<4x9xf32> to vector<4x9x1xf32>
    %290 = vector.shape_cast %288 : vector<1x32xf32> to vector<1x1x32xf32>
    %291 = vector.broadcast %289 : vector<4x9x1xf32> to vector<4x9x32xf32>
    %292 = vector.broadcast %290 : vector<1x1x32xf32> to vector<4x9x32xf32>
    %293 = arith.mulf %291, %292 : vector<4x9x32xf32>
    %294 = arith.addf %285, %293 : vector<4x9x32xf32>
    %295 = vector.extract_strided_slice %1 {offsets = [14, 0, 0], sizes = [1, 4, 9], strides = [1, 1, 1]} : vector<16x5x10xf32> to vector<1x4x9xf32>
    %296 = vector.shape_cast %295 : vector<1x4x9xf32> to vector<4x9xf32>
    %c3_64 = arith.constant 3 : index
    %c0_65 = arith.constant 0 : index
    %297 = vector.load %arg3[%c3_64, %c0_65] : memref<9x32xf32, #tpu.memory_space<vmem>>, vector<1x32xf32>
    %298 = vector.shape_cast %296 : vector<4x9xf32> to vector<4x9x1xf32>
    %299 = vector.shape_cast %297 : vector<1x32xf32> to vector<1x1x32xf32>
    %300 = vector.broadcast %298 : vector<4x9x1xf32> to vector<4x9x32xf32>
    %301 = vector.broadcast %299 : vector<1x1x32xf32> to vector<4x9x32xf32>
    %302 = arith.mulf %300, %301 : vector<4x9x32xf32>
    %303 = arith.addf %294, %302 : vector<4x9x32xf32>
    %304 = vector.extract_strided_slice %1 {offsets = [15, 0, 0], sizes = [1, 4, 9], strides = [1, 1, 1]} : vector<16x5x10xf32> to vector<1x4x9xf32>
    %305 = vector.shape_cast %304 : vector<1x4x9xf32> to vector<4x9xf32>
    %c4_66 = arith.constant 4 : index
    %c0_67 = arith.constant 0 : index
    %306 = vector.load %arg3[%c4_66, %c0_67] : memref<9x32xf32, #tpu.memory_space<vmem>>, vector<1x32xf32>
    %307 = vector.shape_cast %305 : vector<4x9xf32> to vector<4x9x1xf32>
    %308 = vector.shape_cast %306 : vector<1x32xf32> to vector<1x1x32xf32>
    %309 = vector.broadcast %307 : vector<4x9x1xf32> to vector<4x9x32xf32>
    %310 = vector.broadcast %308 : vector<1x1x32xf32> to vector<4x9x32xf32>
    %311 = arith.mulf %309, %310 : vector<4x9x32xf32>
    %312 = arith.addf %303, %311 : vector<4x9x32xf32>
    %313 = vector.extract_strided_slice %1 {offsets = [12, 1, 0], sizes = [1, 4, 9], strides = [1, 1, 1]} : vector<16x5x10xf32> to vector<1x4x9xf32>
    %314 = vector.shape_cast %313 : vector<1x4x9xf32> to vector<4x9xf32>
    %c5_68 = arith.constant 5 : index
    %c0_69 = arith.constant 0 : index
    %315 = vector.load %arg3[%c5_68, %c0_69] : memref<9x32xf32, #tpu.memory_space<vmem>>, vector<1x32xf32>
    %316 = vector.shape_cast %314 : vector<4x9xf32> to vector<4x9x1xf32>
    %317 = vector.shape_cast %315 : vector<1x32xf32> to vector<1x1x32xf32>
    %318 = vector.broadcast %316 : vector<4x9x1xf32> to vector<4x9x32xf32>
    %319 = vector.broadcast %317 : vector<1x1x32xf32> to vector<4x9x32xf32>
    %320 = arith.mulf %318, %319 : vector<4x9x32xf32>
    %321 = arith.addf %312, %320 : vector<4x9x32xf32>
    %322 = vector.extract_strided_slice %1 {offsets = [2, 0, 1], sizes = [1, 4, 9], strides = [1, 1, 1]} : vector<16x5x10xf32> to vector<1x4x9xf32>
    %323 = vector.shape_cast %322 : vector<1x4x9xf32> to vector<4x9xf32>
    %c6_70 = arith.constant 6 : index
    %c0_71 = arith.constant 0 : index
    %324 = vector.load %arg3[%c6_70, %c0_71] : memref<9x32xf32, #tpu.memory_space<vmem>>, vector<1x32xf32>
    %325 = vector.shape_cast %323 : vector<4x9xf32> to vector<4x9x1xf32>
    %326 = vector.shape_cast %324 : vector<1x32xf32> to vector<1x1x32xf32>
    %327 = vector.broadcast %325 : vector<4x9x1xf32> to vector<4x9x32xf32>
    %328 = vector.broadcast %326 : vector<1x1x32xf32> to vector<4x9x32xf32>
    %329 = arith.mulf %327, %328 : vector<4x9x32xf32>
    %330 = arith.addf %321, %329 : vector<4x9x32xf32>
    %331 = vector.extract_strided_slice %1 {offsets = [3, 0, 1], sizes = [1, 4, 9], strides = [1, 1, 1]} : vector<16x5x10xf32> to vector<1x4x9xf32>
    %332 = vector.shape_cast %331 : vector<1x4x9xf32> to vector<4x9xf32>
    %c7_72 = arith.constant 7 : index
    %c0_73 = arith.constant 0 : index
    %333 = vector.load %arg3[%c7_72, %c0_73] : memref<9x32xf32, #tpu.memory_space<vmem>>, vector<1x32xf32>
    %334 = vector.shape_cast %332 : vector<4x9xf32> to vector<4x9x1xf32>
    %335 = vector.shape_cast %333 : vector<1x32xf32> to vector<1x1x32xf32>
    %336 = vector.broadcast %334 : vector<4x9x1xf32> to vector<4x9x32xf32>
    %337 = vector.broadcast %335 : vector<1x1x32xf32> to vector<4x9x32xf32>
    %338 = arith.mulf %336, %337 : vector<4x9x32xf32>
    %339 = arith.addf %330, %338 : vector<4x9x32xf32>
    %340 = vector.extract_strided_slice %1 {offsets = [0, 1, 1], sizes = [1, 4, 9], strides = [1, 1, 1]} : vector<16x5x10xf32> to vector<1x4x9xf32>
    %341 = vector.shape_cast %340 : vector<1x4x9xf32> to vector<4x9xf32>
    %c8_74 = arith.constant 8 : index
    %c0_75 = arith.constant 0 : index
    %342 = vector.load %arg3[%c8_74, %c0_75] : memref<9x32xf32, #tpu.memory_space<vmem>>, vector<1x32xf32>
    %343 = vector.shape_cast %341 : vector<4x9xf32> to vector<4x9x1xf32>
    %344 = vector.shape_cast %342 : vector<1x32xf32> to vector<1x1x32xf32>
    %345 = vector.broadcast %343 : vector<4x9x1xf32> to vector<4x9x32xf32>
    %346 = vector.broadcast %344 : vector<1x1x32xf32> to vector<4x9x32xf32>
    %347 = arith.mulf %345, %346 : vector<4x9x32xf32>
    %348 = arith.addf %339, %347 : vector<4x9x32xf32>
    %349 = vector.shape_cast %2 : vector<1x32xf32> to vector<1x1x32xf32>
    %350 = vector.broadcast %349 : vector<1x1x32xf32> to vector<4x9x32xf32>
    %351 = arith.addf %348, %350 : vector<4x9x32xf32>
    %cst_76 = arith.constant 0.000000e+00 : f32
    %352 = vector.broadcast %cst_76 : f32 to vector<4x9x32xf32>
    %353 = arith.maximumf %351, %352 : vector<4x9x32xf32>
    %354 = arith.truncf %353 : vector<4x9x32xf32> to vector<4x9x32xbf16>
    %cst_77 = arith.constant 0.000000e+00 : f32
    %355 = vector.broadcast %cst_77 : f32 to vector<24x32xf32>
    %356 = vector.extract_strided_slice %90 {offsets = [0, 0, 0], sizes = [3, 8, 32], strides = [1, 1, 1]} : vector<4x9x32xbf16> to vector<3x8x32xbf16>
    %357 = vector.shape_cast %356 : vector<3x8x32xbf16> to vector<24x32xbf16>
    %c0_78 = arith.constant 0 : index
    %c0_79 = arith.constant 0 : index
    %358 = vector.load %arg5[%c0_78, %c0_79] : memref<288x32xbf16, #tpu.memory_space<vmem>>, vector<32x32xbf16>
    %cst_80 = arith.constant dense<0.000000e+00> : vector<24x32xf32>
    %359 = tpu.matmul %357, %358, %cst_80 {dimension_numbers = #tpu.dot_dimension_numbers<[1], [0], [0], [1], [0, 0, 1, 1], [], []>} : vector<24x32xbf16>, vector<32x32xbf16>, vector<24x32xf32> -> vector<24x32xf32>
    %360 = arith.addf %355, %359 : vector<24x32xf32>
    %361 = vector.extract_strided_slice %178 {offsets = [0, 0, 0], sizes = [3, 8, 32], strides = [1, 1, 1]} : vector<4x9x32xbf16> to vector<3x8x32xbf16>
    %362 = vector.shape_cast %361 : vector<3x8x32xbf16> to vector<24x32xbf16>
    %c32 = arith.constant 32 : index
    %c0_81 = arith.constant 0 : index
    %363 = vector.load %arg5[%c32, %c0_81] : memref<288x32xbf16, #tpu.memory_space<vmem>>, vector<32x32xbf16>
    %cst_82 = arith.constant dense<0.000000e+00> : vector<24x32xf32>
    %364 = tpu.matmul %362, %363, %cst_82 {dimension_numbers = #tpu.dot_dimension_numbers<[1], [0], [0], [1], [0, 0, 1, 1], [], []>} : vector<24x32xbf16>, vector<32x32xbf16>, vector<24x32xf32> -> vector<24x32xf32>
    %365 = arith.addf %360, %364 : vector<24x32xf32>
    %366 = vector.extract_strided_slice %90 {offsets = [1, 0, 0], sizes = [3, 8, 32], strides = [1, 1, 1]} : vector<4x9x32xbf16> to vector<3x8x32xbf16>
    %367 = vector.shape_cast %366 : vector<3x8x32xbf16> to vector<24x32xbf16>
    %c64 = arith.constant 64 : index
    %c0_83 = arith.constant 0 : index
    %368 = vector.load %arg5[%c64, %c0_83] : memref<288x32xbf16, #tpu.memory_space<vmem>>, vector<32x32xbf16>
    %cst_84 = arith.constant dense<0.000000e+00> : vector<24x32xf32>
    %369 = tpu.matmul %367, %368, %cst_84 {dimension_numbers = #tpu.dot_dimension_numbers<[1], [0], [0], [1], [0, 0, 1, 1], [], []>} : vector<24x32xbf16>, vector<32x32xbf16>, vector<24x32xf32> -> vector<24x32xf32>
    %370 = arith.addf %365, %369 : vector<24x32xf32>
    %371 = vector.extract_strided_slice %266 {offsets = [0, 0, 0], sizes = [3, 8, 32], strides = [1, 1, 1]} : vector<4x9x32xbf16> to vector<3x8x32xbf16>
    %372 = vector.shape_cast %371 : vector<3x8x32xbf16> to vector<24x32xbf16>
    %c96 = arith.constant 96 : index
    %c0_85 = arith.constant 0 : index
    %373 = vector.load %arg5[%c96, %c0_85] : memref<288x32xbf16, #tpu.memory_space<vmem>>, vector<32x32xbf16>
    %cst_86 = arith.constant dense<0.000000e+00> : vector<24x32xf32>
    %374 = tpu.matmul %372, %373, %cst_86 {dimension_numbers = #tpu.dot_dimension_numbers<[1], [0], [0], [1], [0, 0, 1, 1], [], []>} : vector<24x32xbf16>, vector<32x32xbf16>, vector<24x32xf32> -> vector<24x32xf32>
    %375 = arith.addf %370, %374 : vector<24x32xf32>
    %376 = vector.extract_strided_slice %354 {offsets = [0, 0, 0], sizes = [3, 8, 32], strides = [1, 1, 1]} : vector<4x9x32xbf16> to vector<3x8x32xbf16>
    %377 = vector.shape_cast %376 : vector<3x8x32xbf16> to vector<24x32xbf16>
    %c128 = arith.constant 128 : index
    %c0_87 = arith.constant 0 : index
    %378 = vector.load %arg5[%c128, %c0_87] : memref<288x32xbf16, #tpu.memory_space<vmem>>, vector<32x32xbf16>
    %cst_88 = arith.constant dense<0.000000e+00> : vector<24x32xf32>
    %379 = tpu.matmul %377, %378, %cst_88 {dimension_numbers = #tpu.dot_dimension_numbers<[1], [0], [0], [1], [0, 0, 1, 1], [], []>} : vector<24x32xbf16>, vector<32x32xbf16>, vector<24x32xf32> -> vector<24x32xf32>
    %380 = arith.addf %375, %379 : vector<24x32xf32>
    %381 = vector.extract_strided_slice %266 {offsets = [1, 0, 0], sizes = [3, 8, 32], strides = [1, 1, 1]} : vector<4x9x32xbf16> to vector<3x8x32xbf16>
    %382 = vector.shape_cast %381 : vector<3x8x32xbf16> to vector<24x32xbf16>
    %c160 = arith.constant 160 : index
    %c0_89 = arith.constant 0 : index
    %383 = vector.load %arg5[%c160, %c0_89] : memref<288x32xbf16, #tpu.memory_space<vmem>>, vector<32x32xbf16>
    %cst_90 = arith.constant dense<0.000000e+00> : vector<24x32xf32>
    %384 = tpu.matmul %382, %383, %cst_90 {dimension_numbers = #tpu.dot_dimension_numbers<[1], [0], [0], [1], [0, 0, 1, 1], [], []>} : vector<24x32xbf16>, vector<32x32xbf16>, vector<24x32xf32> -> vector<24x32xf32>
    %385 = arith.addf %380, %384 : vector<24x32xf32>
    %386 = vector.extract_strided_slice %90 {offsets = [0, 1, 0], sizes = [3, 8, 32], strides = [1, 1, 1]} : vector<4x9x32xbf16> to vector<3x8x32xbf16>
    %387 = vector.shape_cast %386 : vector<3x8x32xbf16> to vector<24x32xbf16>
    %c192 = arith.constant 192 : index
    %c0_91 = arith.constant 0 : index
    %388 = vector.load %arg5[%c192, %c0_91] : memref<288x32xbf16, #tpu.memory_space<vmem>>, vector<32x32xbf16>
    %cst_92 = arith.constant dense<0.000000e+00> : vector<24x32xf32>
    %389 = tpu.matmul %387, %388, %cst_92 {dimension_numbers = #tpu.dot_dimension_numbers<[1], [0], [0], [1], [0, 0, 1, 1], [], []>} : vector<24x32xbf16>, vector<32x32xbf16>, vector<24x32xf32> -> vector<24x32xf32>
    %390 = arith.addf %385, %389 : vector<24x32xf32>
    %391 = vector.extract_strided_slice %178 {offsets = [0, 1, 0], sizes = [3, 8, 32], strides = [1, 1, 1]} : vector<4x9x32xbf16> to vector<3x8x32xbf16>
    %392 = vector.shape_cast %391 : vector<3x8x32xbf16> to vector<24x32xbf16>
    %c224 = arith.constant 224 : index
    %c0_93 = arith.constant 0 : index
    %393 = vector.load %arg5[%c224, %c0_93] : memref<288x32xbf16, #tpu.memory_space<vmem>>, vector<32x32xbf16>
    %cst_94 = arith.constant dense<0.000000e+00> : vector<24x32xf32>
    %394 = tpu.matmul %392, %393, %cst_94 {dimension_numbers = #tpu.dot_dimension_numbers<[1], [0], [0], [1], [0, 0, 1, 1], [], []>} : vector<24x32xbf16>, vector<32x32xbf16>, vector<24x32xf32> -> vector<24x32xf32>
    %395 = arith.addf %390, %394 : vector<24x32xf32>
    %396 = vector.extract_strided_slice %90 {offsets = [1, 1, 0], sizes = [3, 8, 32], strides = [1, 1, 1]} : vector<4x9x32xbf16> to vector<3x8x32xbf16>
    %397 = vector.shape_cast %396 : vector<3x8x32xbf16> to vector<24x32xbf16>
    %c256 = arith.constant 256 : index
    %c0_95 = arith.constant 0 : index
    %398 = vector.load %arg5[%c256, %c0_95] : memref<288x32xbf16, #tpu.memory_space<vmem>>, vector<32x32xbf16>
    %cst_96 = arith.constant dense<0.000000e+00> : vector<24x32xf32>
    %399 = tpu.matmul %397, %398, %cst_96 {dimension_numbers = #tpu.dot_dimension_numbers<[1], [0], [0], [1], [0, 0, 1, 1], [], []>} : vector<24x32xbf16>, vector<32x32xbf16>, vector<24x32xf32> -> vector<24x32xf32>
    %400 = arith.addf %395, %399 : vector<24x32xf32>
    %c0_97 = arith.constant 0 : index
    %c0_98 = arith.constant 0 : index
    %401 = vector.load %arg6[%c0_97, %c0_98] : memref<1x32xf32, #tpu.memory_space<vmem>>, vector<1x32xf32>
    %402 = vector.broadcast %401 : vector<1x32xf32> to vector<24x32xf32>
    %403 = arith.addf %400, %402 : vector<24x32xf32>
    %cst_99 = arith.constant 0.000000e+00 : f32
    %404 = vector.broadcast %cst_99 : f32 to vector<24x32xf32>
    %405 = arith.maximumf %403, %404 : vector<24x32xf32>
    %cst_100 = arith.constant 0.000000e+00 : f32
    %406 = vector.broadcast %cst_100 : f32 to vector<8x32xf32>
    %407 = vector.extract_strided_slice %405 {offsets = [0, 0], sizes = [8, 32], strides = [1, 1]} : vector<24x32xf32> to vector<8x32xf32>
    %408 = arith.truncf %407 : vector<8x32xf32> to vector<8x32xbf16>
    %c0_101 = arith.constant 0 : index
    %c0_102 = arith.constant 0 : index
    %409 = vector.load %arg7[%c0_101, %c0_102] : memref<96x32xbf16, #tpu.memory_space<vmem>>, vector<32x32xbf16>
    %cst_103 = arith.constant dense<0.000000e+00> : vector<8x32xf32>
    %410 = tpu.matmul %408, %409, %cst_103 {dimension_numbers = #tpu.dot_dimension_numbers<[1], [0], [0], [1], [0, 0, 1, 1], [], []>} : vector<8x32xbf16>, vector<32x32xbf16>, vector<8x32xf32> -> vector<8x32xf32>
    %411 = arith.addf %406, %410 : vector<8x32xf32>
    %412 = vector.extract_strided_slice %405 {offsets = [8, 0], sizes = [8, 32], strides = [1, 1]} : vector<24x32xf32> to vector<8x32xf32>
    %413 = arith.truncf %412 : vector<8x32xf32> to vector<8x32xbf16>
    %c32_104 = arith.constant 32 : index
    %c0_105 = arith.constant 0 : index
    %414 = vector.load %arg7[%c32_104, %c0_105] : memref<96x32xbf16, #tpu.memory_space<vmem>>, vector<32x32xbf16>
    %cst_106 = arith.constant dense<0.000000e+00> : vector<8x32xf32>
    %415 = tpu.matmul %413, %414, %cst_106 {dimension_numbers = #tpu.dot_dimension_numbers<[1], [0], [0], [1], [0, 0, 1, 1], [], []>} : vector<8x32xbf16>, vector<32x32xbf16>, vector<8x32xf32> -> vector<8x32xf32>
    %416 = arith.addf %411, %415 : vector<8x32xf32>
    %417 = vector.extract_strided_slice %405 {offsets = [16, 0], sizes = [8, 32], strides = [1, 1]} : vector<24x32xf32> to vector<8x32xf32>
    %418 = arith.truncf %417 : vector<8x32xf32> to vector<8x32xbf16>
    %c64_107 = arith.constant 64 : index
    %c0_108 = arith.constant 0 : index
    %419 = vector.load %arg7[%c64_107, %c0_108] : memref<96x32xbf16, #tpu.memory_space<vmem>>, vector<32x32xbf16>
    %cst_109 = arith.constant dense<0.000000e+00> : vector<8x32xf32>
    %420 = tpu.matmul %418, %419, %cst_109 {dimension_numbers = #tpu.dot_dimension_numbers<[1], [0], [0], [1], [0, 0, 1, 1], [], []>} : vector<8x32xbf16>, vector<32x32xbf16>, vector<8x32xf32> -> vector<8x32xf32>
    %421 = arith.addf %416, %420 : vector<8x32xf32>
    %c0_110 = arith.constant 0 : index
    %c0_111 = arith.constant 0 : index
    %422 = vector.load %arg8[%c0_110, %c0_111] : memref<1x32xf32, #tpu.memory_space<vmem>>, vector<1x32xf32>
    %423 = vector.broadcast %422 : vector<1x32xf32> to vector<8x32xf32>
    %424 = arith.addf %421, %423 : vector<8x32xf32>
    %c0_112 = arith.constant 0 : index
    %c0_113 = arith.constant 0 : index
    %c0_114 = arith.constant 0 : index
    %425 = vector.load %arg9[%c0_112, %c0_113, %c0_114] : memref<1x8x32xf32, #tpu.memory_space<vmem>>, vector<1x8x32xf32>
    %426 = vector.shape_cast %425 : vector<1x8x32xf32> to vector<8x32xf32>
    %427 = vector.shape_cast %424 : vector<8x32xf32> to vector<1x8x32xf32>
    tpu.vector_store %arg9[%c0_112, %c0_113, %c0_114], %427 {strides = array<i32>} : memref<1x8x32xf32, #tpu.memory_space<vmem>>, vector<1x8x32xf32>,
    return
  }
  func.func @transform_0(%arg0: i32, %arg1: i32) -> (i32, i32, i32, i32, i32) {
    %c0_i32 = arith.constant 0 : i32
    %c0_i32_0 = arith.constant 0 : i32
    %c0_i32_1 = arith.constant 0 : i32
    %c0_i32_2 = arith.constant 0 : i32
    return %arg0, %arg1, %c0_i32, %c0_i32_0, %c0_i32_1 : i32, i32, i32, i32, i32
  }
  func.func @transform_1(%arg0: i32, %arg1: i32) -> (i32, i32) {
    %c0_i32 = arith.constant 0 : i32
    %c0_i32_0 = arith.constant 0 : i32
    %c0_i32_1 = arith.constant 0 : i32
    return %c0_i32, %c0_i32_0 : i32, i32
  }
  func.func @transform_2(%arg0: i32, %arg1: i32) -> (i32, i32) {
    %c0_i32 = arith.constant 0 : i32
    %c0_i32_0 = arith.constant 0 : i32
    %c0_i32_1 = arith.constant 0 : i32
    return %c0_i32, %c0_i32_0 : i32, i32
  }
  func.func @transform_3(%arg0: i32, %arg1: i32) -> (i32, i32) {
    %c0_i32 = arith.constant 0 : i32
    %c0_i32_0 = arith.constant 0 : i32
    %c0_i32_1 = arith.constant 0 : i32
    return %c0_i32, %c0_i32_0 : i32, i32
  }
  func.func @transform_4(%arg0: i32, %arg1: i32) -> (i32, i32) {
    %c0_i32 = arith.constant 0 : i32
    %c0_i32_0 = arith.constant 0 : i32
    %c0_i32_1 = arith.constant 0 : i32
    return %c0_i32, %c0_i32_0 : i32, i32
  }
  func.func @transform_5(%arg0: i32, %arg1: i32) -> (i32, i32) {
    %c0_i32 = arith.constant 0 : i32
    %c0_i32_0 = arith.constant 0 : i32
    %c0_i32_1 = arith.constant 0 : i32
    return %c0_i32, %c0_i32_0 : i32, i32
  }
  func.func @transform_6(%arg0: i32, %arg1: i32) -> (i32, i32) {
    %c0_i32 = arith.constant 0 : i32
    %c0_i32_0 = arith.constant 0 : i32
    %c0_i32_1 = arith.constant 0 : i32
    return %c0_i32, %c0_i32_0 : i32, i32
  }
  func.func @transform_7(%arg0: i32, %arg1: i32) -> (i32, i32, i32) {
    %c0_i32 = arith.constant 0 : i32
    %c0_i32_0 = arith.constant 0 : i32
    return %arg0, %arg1, %c0_i32 : i32, i32, i32
  }
}

</mosaic_0001>

<bundles_post_ra>
// kernel: tpu_custom_call.1
= control target key start
LH: loop header
LB: loop body
LE: loop exit
PB: predicated region body
PF: predicated region fallthrough
CT: control target
= control target key end

     0   :  { %12 = vsyncpa [#allocation3], 0  ;;  %s4564_s0 = inlined_call_operand.vmem [shape: f32[2,1,16,5,10], index: 0, kind: input, shape index: {}]   ;;  %s4565_s1 = inlined_call_operand.vmem [shape: f32[9,32], index: 1, kind: input, shape index: {}]   ;;  %s4566_s2 = inlined_call_operand.vmem [shape: f32[1,32], index: 2, kind: input, shape index: {}]   ;;  %s4567_s3 = inlined_call_operand.vmem [shape: bf16[288,32], index: 3, kind: input, shape index: {}]   ;;  %s4568_s4 = inlined_call_operand.vmem [shape: f32[1,32], index: 4, kind: input, shape index: {}]   ;;  %s4569_s5 = inlined_call_operand.vmem [shape: bf16[96,32], index: 5, kind: input, shape index: {}]   ;;  %s4570_s6 = inlined_call_operand.vmem [shape: f32[1,32], index: 6, kind: input, shape index: {}]   ;;  %s4571_s7 = inlined_call_operand.hbm [shape: f32[2,8,32], index: 7, kind: output, shape index: {}]  }
   0x1   :  { %14 = vsyncpa [#allocation3 + $0x1], 0  ;;  %s3321_s24 = smov 0   ;;  %s3323_s25 = smov 0  }
   0x2   :  { %s3325_s26 = smov 0   ;;  %s3327_s27 = smov 0  }
   0x3   :  { %s3329_s28 = smov 0   ;;  %s3331_s29 = smov 0  }
   0x4 LB: > { %s2844_s30 = sadd.s32 4294967295, %s3276_s29   ;;  %s2845_s8 = sadd.s32 4294967294, %s3276_s29   ;;  %s3276_s29 = sphi %s3331_s29, %s20_s29   ;;  %s3272_s28 = sphi %s3329_s28, %s4644_s28   ;;  %s3268_s27 = sphi %s3327_s27, %s4643_s27   ;;  %s3264_s26 = sphi %s3325_s26, %s4642_s26   ;;  %s3260_s25 = sphi %s3323_s25, %s4641_s25   ;;  %s3256_s24 = sphi %s3321_s24, %s4640_s24  }
   0x5   : > { %s32_s9 = sadd.s32 1, %s3272_s28  ;;  %s195_s10 = sadd.s32 1, %s3264_s26 }
   0x6   : > { %p34_p0 = scmp.ge.s32.totalorder %s32_s9, 2  ;;  %p205_p1 = scmp.ne.s32.totalorder %s3264_s26, %s3260_s25 }
   0x7   : > { %p206_p2 = scmp.eq.s32.totalorder %s2844_s30, 1  ;;  %p211_p3 = scmp.ne.s32.totalorder %s3260_s25, %s3256_s24 }
   0x8   : > { %s4646_s9 = smov (%p34_p0, %s32_s9), 0  ;;  %p212_p5 = scmp.eq.s32.totalorder %s2845_s8, 1 }
   0x9   : > { %p3361_p4 = por %p206_p2, %p205_p1  ;;  %s190_s12 = ssub.s32 %s3272_s28, %s4646_s9 }
   0xa   : > { %p2848_p6 = scmp.ge.s32.totalorder %s3276_s29, 1  ;;  %p193_p7 = scmp.eq.s32.totalorder %s190_s12, 0 }
   0xb   : > { %p3368_p8 = por %p212_p5, %p211_p3  ;;  %p260_p9 = scmp.lt.s32.totalorder %s3276_s29, 3 }
   0xc   : > { %s3374_s14 = scalar_select %p193_p7, %s3264_s26, %s195_s10  }
   0xd   : > { %p261_p10 = pnand %p2848_p6, %p260_p9 }
   0xf   : > { %264 = sbr.rel (%p261_p10) target bundleno = 863 (0x35f), region = 48 }
  0x16   : > { %p296_p11 = scmp.lt.s32.totalorder %s3268_s27, 1  ;;  %v324_v0 = vlaneseq  ;;  %v3166_v39 = vld [vmem:[%s4567_s3 + $0x18] sm:$0xff]   ;;  %v3167_v38 = vld [vmem:[%s4567_s3 + $0x8] sm:$0xff]   ;;  %vm1756_vm0 = vcmask 261120   ;;  %vm2209_vm1 = vsmask.f32 3328 }
  0x17   : > { %vm2210_vm2 = vsmask.f32 7440  ;;  %vm3279_vm4 = vmmov 0   ;;  %s2939_s23 = sshll.u32 %s3268_s27, 7  ;;  %s3280_s17 = smov [#allocation2]  }
  0x18   : > { %s297_s15 = scalar_select %p296_p11, %s3268_s27, 1  ;;  %v325_v1 = vshrl.u32 %v324_v0, 7  ;;  %vm4380_vm3 = vmor %vm2209_vm1, %vm2210_vm2 }
  0x19   : > { %s3202_s18 = sshll.u32 %s3280_s17, 4  ;;  %s3203_s18 = int_to_ptr.vmem [resolvable:$false] %s3202_s18 }
  0x1a   : > { %s2942_s16 = sshll.u32 %s297_s15, 7  ;;  %v3378_v2 = vsub.s32 0, %v325_v1  ;;  %v3380_v3 = vsub.s32 1, %v325_v1  ;;  %v3407_v10 = vsub.s32 2, %v325_v1  ;;  %v3410_v12 = vsub.s32 3, %v325_v1  ;;  %s4516_s15 = scalar_lea.hbm %s4571_s7, %s2939_s23 }
  0x1b   : > { %s3385_s19 = scalar_lea.vmem %s4564_s0, %s2942_s16 }
  0x1c   : > { %v309_v4 = vld [vmem:[%s3385_s19 + $0x18] sm:$0x1f]  ;;  %v3389_v5 = vld [vmem:[%s3385_s19 + $0x10] sm:$0x1f]  ;;  %v306_v11 = vld [vmem:[%s3385_s19] sm:$0x1f] }
  0x1d   : > { %v3392_v6 = vrot.slane %v309_v4, %v3378_v2  ;;  %v3396_v7 = vrot.slane %v3389_v5, %v3378_v2  ;;  %v3401_v8 = vrot.slane %v309_v4, %v3380_v3  ;;  %v3405_v9 = vrot.slane %v3389_v5, %v3380_v3  ;;  %4595 = vst [vmem:[#allocation5_spill] sm:$0xff] %v3410_v12  ;;  %v3413_v13 = vld [vmem:[%s3385_s19 + $0x40] sm:$0x1f]  ;;  %v3416_v14 = vld [vmem:[%s3385_s19 + $0x48] sm:$0x1f] }
  0x1e   : > { %v3421_v15 = vrot.slane %v309_v4, %v3407_v10  ;;  %v3425_v16 = vrot.slane %v3389_v5, %v3407_v10  ;;  %v3428_v17 = vld [vmem:[%s3385_s19 + $0x60] sm:$0x1f]  ;;  %v3431_v18 = vld [vmem:[%s3385_s19 + $0x68] sm:$0x1f]  ;;  %v3434_v19 = vrot.slane %v306_v11, %v3407_v10  ;;  %v3437_v20 = vld [vmem:[%s3385_s19 + $0x30] sm:$0x1f]  ;;  %v3441_v21 = vrot.slane %v3413_v13, %v3380_v3 }
  0x1f   : > { %951 = vbcast.lane.b32.xlu1 %v3392_v6, 256  ;;  %459 = vbcast.lane.b32.xlu0 %v3396_v7, 256  ;;  %4596 = vst [vmem:[#allocation6_spill] sm:$0xff] %v3431_v18  ;;  %v3445_v22 = vrot.slane %v3413_v13, %v3378_v2  ;;  %v3449_v23 = vrot.slane %v3416_v14, %v3378_v2  ;;  %v3456_v25 = vld [vmem:[%s3385_s19 + $0x78] sm:$0x1f] }
  0x20   : > { %v3453_v24 = vrot.slane %v3413_v13, %v3407_v10  ;;  %v3461_v26 = vrot.slane %v306_v11, %v3380_v3  ;;  %v3465_v27 = vrot.slane %v3416_v14, %v3380_v3  ;;  %v3469_v28 = vrot.slane %v3416_v14, %v3407_v10  ;;  %v307_v42 = vld [vmem:[%s3385_s19 + $0x8] sm:$0x1f]  ;;  %v313_v45 = vld [vmem:[%s3385_s19 + $0x38] sm:$0x1f]  ;;  %v310_v50 = vld [vmem:[%s3385_s19 + $0x20] sm:$0x1f] }
  0x21   : > { %v1207_v29 = vrot.slane %v3428_v17, %v3378_v2  ;;  %v1218_v30 = vrot.slane %v3428_v17, %v3380_v3  ;;  %v1229_v31 = vrot.slane %v3428_v17, %v3407_v10  ;;  %v1267_v32 = vrot.slane %v3431_v18, %v3378_v2  ;;  %v3560_v57 = vld [vmem:[%s3385_s19 + $0x50] sm:$0x1f]  ;;  %v311_v62 = vld [vmem:[%s3385_s19 + $0x28] sm:$0x1f]  ;;  %v317_v1 = vld [vmem:[%s3385_s19 + $0x58] sm:$0x1f] }
  0x22   : > { %4597 = vst [vmem:[#allocation7_spill] sm:$0xff] %v3469_v28  ;;  %v1278_v33 = vrot.slane %v3431_v18, %v3380_v3  ;;  %v3483_v34 = vrot.slane %v3437_v20, %v3378_v2  ;;  %v1289_v35 = vrot.slane %v3431_v18, %v3407_v10  ;;  %v3490_v36 = vrot.slane %v306_v11, %v3410_v12 }
  0x23   : > { %962 = vbcast.lane.b32.xlu1 %v3401_v8, 256  ;;  %470 = vbcast.lane.b32.xlu0 %v3405_v9, 256  ;;  %v1599_v37 = vrot.slane %v3456_v25, %v3378_v2  ;;  %v3502_v40 = vrot.slane %v3437_v20, %v3407_v10  ;;  %v3506_v41 = vrot.slane %v3437_v20, %v3380_v3 }
  0x24   : > { %4598 = vst [vmem:[#allocation8_spill] sm:$0xff] %v3490_v36  ;;  %v3512_v43 = vrot.slane %v307_v42, %v3378_v2  ;;  %v3515_v44 = vrot.slane %v306_v11, %v3378_v2  ;;  %v3521_v46 = vrot.slane %v313_v45, %v3378_v2  ;;  %v3524_v47 = vrot.slane %v307_v42, %v3380_v3 }
  0x25   : > { %v3529_v48 = vrot.slane %v307_v42, %v3407_v10  ;;  %v3532_v49 = vrot.slane %v313_v45, %v3380_v3  ;;  %v3538_v51 = vrot.slane %v310_v50, %v3380_v3  ;;  %v3541_v52 = vrot.slane %v313_v45, %v3407_v10  ;;  %v3164_v45 = vld [vmem:[%s4567_s3 + $0x10] sm:$0xff]  }
  0x26   : > { %v3546_v53 = vrot.slane %v307_v42, %v3410_v12  ;;  %v3549_v54 = vrot.slane %v310_v50, %v3407_v10  ;;  %v3554_v55 = vrot.slane %v310_v50, %v3378_v2  ;;  %v3557_v56 = vrot.slane %v310_v50, %v3410_v12  ;;  %3011 = vmatprep.subr.bf16.mxu0 %v3164_v45  ;;  %v3165_v50 = vld [vmem:[%s4567_s3] sm:$0xff]  }
  0x27   : > { %973 = vbcast.lane.b32.xlu1 %v3421_v15, 256  ;;  %481 = vbcast.lane.b32.xlu0 %v3425_v16, 256  ;;  %4599 = vst [vmem:[#allocation9_spill] sm:$0xff] %v3541_v52  ;;  %v3566_v58 = vrot.slane %v3560_v57, %v3380_v3  ;;  %v3570_v59 = vrot.slane %v3560_v57, %v3378_v2 }
  0x28   : > { %4600 = vst [vmem:[#allocation10_spill] sm:$0xff] %v3546_v53  ;;  %4601 = vst [vmem:[#allocation11_spill] sm:$0xff] %v3557_v56  ;;  %v3576_v60 = vrot.slane %v3560_v57, %v3407_v10  ;;  %v3580_v61 = vrot.slane %v3389_v5, %v3410_v12  ;;  %v3586_v63 = vrot.slane %v311_v62, %v3380_v3  ;;  %3012 = vmatpush3.bf16.msra.mxu0 %v3164_v45 }
  0x29   : > { %4602 = vst [vmem:[#allocation12_spill] sm:$0xff] %v3566_v58  ;;  %4603 = vst [vmem:[#allocation13_spill] sm:$0xff] %v3570_v59  ;;  %v3589_v0 = vrot.slane %v311_v62, %v3378_v2  ;;  %v3595_v4 = vrot.slane %v317_v1, %v3380_v3  ;;  %v3598_v5 = vrot.slane %v317_v1, %v3378_v2  ;;  %3019 = vmatprep.subr.bf16.mxu1 %v3165_v50 }
  0x2a   : > { %4604 = vst [vmem:[#allocation14_spill] sm:$0xff] %v3576_v60  ;;  %v3603_v11 = vrot.slane %v317_v1, %v3407_v10  ;;  %v3606_v42 = vrot.slane %v311_v62, %v3407_v10  ;;  %v3621_v1 = vrot.slane %v311_v62, %v3410_v12  ;;  %3020 = vmatpush3.bf16.msra.mxu1 %v3165_v50 }
  0x2b   : > { %351 = vbcast.lane.b32.xlu1 %v3434_v19, 256  ;;  %340 = vbcast.lane.b32.xlu0 %v3461_v26, 256  ;;  %4605 = vst [vmem:[#allocation15_spill] sm:$0xff] %v3595_v4  ;;  %4606 = vst [vmem:[#allocation16_spill] sm:$0xff] %v3598_v5  ;;  %v3633_v62 = vrot.slane %v3413_v13, %v3410_v12  ;;  %v3643_v13 = vrot.slane %v3437_v20, %v3410_v12  ;;  %v3660_v20 = vld [vmem:[%s3385_s19 + $0x70] sm:$0x1f] }
  0x2c   : > { %4607 = vst [vmem:[#allocation17_spill] sm:$0xff] %v3603_v11  ;;  %4608 = vst [vmem:[#allocation18_spill] sm:$0xff] %v3621_v1  ;;  %3013 = vmatprep.subr.bf16.mxu0 %v3166_v39  ;;  %3021 = vmatprep.subr.bf16.mxu1 %v3167_v38  ;;  %s293_s19 = sand.u32 1, %s3260_s25  }
  0x2d   : > { %4609 = vst [vmem:[#allocation19_spill] sm:$0xff] %v3633_v62  ;;  %3014 = vmatpush3.bf16.msra.mxu0 %v3166_v39  ;;  %4610 = vst [vmem:[#allocation20_spill] sm:$0xff] %v3643_v13  ;;  %s2849_s20 = sshll.u32 %s293_s19, 3  ;;  %s2753_s27 = scalar_lea.sflag [#allocation3], %s293_s19 }
  0x2e   : > { %3022 = vmatpush3.bf16.msra.mxu1 %v3167_v38  ;;  %4611 = vst [vmem:[#allocation21_spill] sm:$0xff] %v3660_v20  ;;  %s295_s30 = scalar_lea.vmem [#allocation2], %s2849_s20  ;;  %s3204_s20 = scalar_lea.vmem %s3203_s18, 256 }
  0x2f   : > { %654 = vbcast.lane.b32.xlu1 %v3483_v34, 256  ;;  %362 = vbcast.lane.b32.xlu0 %v3490_v36, 256  ;;  %s2767_s8 = sshll.u32 %s295_s30, 4  ;;  %s4518_s8 = int_to_ptr.vmem [resolvable:$true] %s2767_s8 }
  0x30   : > { %s3198_s16 = scalar_lea.vmem %s4518_s8, 128  ;;  %p3205_p1 = scmp.lt.s32.totalorder %s4518_s8, %s3203_s18 }
  0x31   : > { %p3199_p12 = scmp.ne.s32.totalorder %s4518_s8, %s3198_s16  ;;  %p3206_p2 = scmp.lt.s32.totalorder %s3204_s20, %s3198_s16 }
  0x33   : > { %676 = vbcast.lane.b32.xlu1 %v3502_v40, 256  ;;  %665 = vbcast.lane.b32.xlu0 %v3506_v41, 256  ;;  %p3200_p13 = pnand %p3199_p12, %p3361_p4  ;;  %p3207_p3 = por %p3206_p2, %p3205_p1 }
  0x35   : > { %p3201_p0 = pneg %p3200_p13 }
  0x37   : > { %394 = vbcast.lane.b32.xlu1 %v3512_v43, 256  ;;  %329 = vbcast.lane.b32.xlu0 %v3515_v44, 256  ;;  %p3208_p5 = pnand %p3207_p3, %p3201_p0 }
  0x3b   : > { %1020 = vbcast.lane.b32.xlu1 %v3521_v46, 256  ;;  %405 = vbcast.lane.b32.xlu0 %v3524_v47, 256 }
  0x3f   : > { %416 = vbcast.lane.b32.xlu1 %v3529_v48, 256  ;;  %1031 = vbcast.lane.b32.xlu0 %v3532_v49, 256 }
  0x43   : > { %535 = vbcast.lane.b32.xlu1 %v3538_v51, 256  ;;  %1042 = vbcast.lane.b32.xlu0 %v3541_v52, 256 }
  0x47   : > { %427 = vbcast.lane.b32.xlu1 %v3546_v53, 256  ;;  %546 = vbcast.lane.b32.xlu0 %v3549_v54, 256 }
  0x4b   : > { %524 = vbcast.lane.b32.xlu1 %v3554_v55, 256  ;;  %557 = vbcast.lane.b32.xlu0 %v3557_v56, 256 }
  0x4f   : > { %860 = vbcast.lane.b32.xlu1 %v3566_v58, 256  ;;  %849 = vbcast.lane.b32.xlu0 %v3570_v59, 256 }
  0x53   : > { %871 = vbcast.lane.b32.xlu1 %v3576_v60, 256  ;;  %492 = vbcast.lane.b32.xlu0 %v3580_v61, 256 }
  0x57   : > { %600 = vbcast.lane.b32.xlu1 %v3586_v63, 256  ;;  %589 = vbcast.lane.b32.xlu0 %v3589_v0, 256 }
  0x5b   : > { %1100 = vbcast.lane.b32.xlu1 %v3595_v4, 256  ;;  %1089 = vbcast.lane.b32.xlu0 %v3598_v5, 256  ;;  %v3760_v5 = vld [vmem:[%s4565_s1 + $0x2] ss:$0 sm:$0xff] }
  0x5f   : > { %1111 = vbcast.lane.b32.xlu1 %v3603_v11, 256  ;;  %611 = vbcast.lane.b32.xlu0 %v3606_v42, 256 }
  0x63   : > { %730 = vbcast.lane.b32.xlu1 %v3441_v21, 256  ;;  %719 = vbcast.lane.b32.xlu0 %v3445_v22, 256 }
  0x67   : > { %784 = vbcast.lane.b32.xlu1 %v3449_v23, 256  ;;  %741 = vbcast.lane.b32.xlu0 %v3453_v24, 256 }
  0x6b   : > { %622 = vbcast.lane.b32.xlu1 %v3621_v1, 256  ;;  %795 = vbcast.lane.b32.xlu0 %v3465_v27, 256 }
  0x6f   : > { %806 = vbcast.lane.b32.xlu1 %v3469_v28, 256  ;;  %752 = vbcast.lane.b32.xlu0 %v3633_v62, 256 }
  0x73   : > { %344 = vbcast.lane.b32.xlu1 %v3461_v26, 264  ;;  %333 = vbcast.lane.b32.xlu0 %v3515_v44, 264 }
  0x77   : > { %409 = vbcast.lane.b32.xlu1 %v3524_v47, 264  ;;  %398 = vbcast.lane.b32.xlu0 %v3512_v43, 264 }
  0x7b   : > { %355 = vbcast.lane.b32.xlu1 %v3434_v19, 264  ;;  %687 = vbcast.lane.b32.xlu0 %v3643_v13, 256 }
  0x7f   : > { %1209 = vbcast.lane.b32.xlu1 %v1207_v29, 256  ;;  %420 = vbcast.lane.b32.xlu0 %v3529_v48, 264  ;;  %v1327_v29 = vrot.slane %v3660_v20, %v3378_v2 }
  0x83   : > { %463 = vbcast.lane.b32.xlu1 %v3396_v7, 264  ;;  %1220 = vbcast.lane.b32.xlu0 %v1218_v30, 256  ;;  %v1338_v30 = vrot.slane %v3660_v20, %v3380_v3 }
  0x87   : > { %1231 = vbcast.lane.b32.xlu1 %v1229_v31, 256  ;;  %474 = vbcast.lane.b32.xlu0 %v3405_v9, 264 }
  0x8b   : > { %1269 = vbcast.lane.b32.xlu1 %v1267_v32, 256  ;;  %485 = vbcast.lane.b32.xlu0 %v3425_v16, 264  ;;  %v3676_v32 = vrot.slane %v3416_v14, %v3410_v12 }
  0x8d   : > { %4612 = vst [vmem:[#allocation22_spill] sm:$0xff] %v3676_v32 }
  0x8f   : > { %1329 = vbcast.lane.b32.xlu1 %v1327_v29, 256  ;;  %1280 = vbcast.lane.b32.xlu0 %v1278_v33, 256  ;;  %v1349_v33 = vrot.slane %v3660_v20, %v3407_v10 }
  0x91   : > { %v952_v31 = vpop.permute.xlu1 %951  ;;  %v460_v38 = vpop.permute.xlu0 %459 }
  0x92   : > { %v502_v13 = vmul.f32 %v3760_v5, %v460_v38 }
  0x93   : > { %528 = vbcast.lane.b32.xlu1 %v3554_v55, 264  ;;  %1340 = vbcast.lane.b32.xlu0 %v1338_v30, 256 }
  0x95   : > { %v963_v39 = vpop.permute.xlu1 %962  ;;  %v3678_v45 = vpop.permute.xlu0 %470 }
  0x97   : > { %817 = vbcast.lane.b32.xlu1 %v3676_v32, 256  ;;  %539 = vbcast.lane.b32.xlu0 %v3538_v51, 264 }
  0x99   : > { %v974_v50 = vpop.permute.xlu1 %973  ;;  %v482_v29 = vpop.permute.xlu0 %481 }
  0x9a   : > { %v506_v20 = vmul.f32 %v3760_v5, %v482_v29 }
  0x9b   : > { %1351 = vbcast.lane.b32.xlu1 %v1349_v33, 256  ;;  %1291 = vbcast.lane.b32.xlu0 %v1289_v35, 256  ;;  %v4613_v33 = vrot.slane %v3456_v25, %v3380_v3  ;;  %v3705_v35 = vrot.slane %v3560_v57, %v3410_v12 }
  0x9d   : > { %v3687_v55 = vpop.permute.xlu1 %351  ;;  %v3689_v14 = vpop.permute.xlu0 %340  ;;  %4614 = vst [vmem:[#allocation23_spill] sm:$0xff] %v3705_v35 }
  0x9e   : > { %v991_v1 = vmul.f32 %v3760_v5, %v3689_v14 }
  0x9f   : > { %1601 = vbcast.lane.b32.xlu1 %v1599_v37, 256  ;;  %550 = vbcast.lane.b32.xlu0 %v3549_v54, 264  ;;  %v3716_v37 = vld [vmem:[%s4567_s3 + $0x20] sm:$0xff]  }
  0xa0   : > { %4615 = vst [vmem:[#allocation24_spill] sm:$0xff] %v3716_v37  ;;  %3027 = vmatprep.subr.bf16.mxu0 %v3716_v37 }
  0xa1   : > { %v3695_v51 = vpop.permute.xlu1 %654  ;;  %v3697_v30 = vpop.permute.xlu0 %362 }
  0xa3   : > { %593 = vbcast.lane.b32.xlu1 %v3589_v0, 264  ;;  %1612 = vbcast.lane.b32.xlu0 %v4613_v33, 256 }
  0xa5   : > { %v3707_v32 = vpop.permute.xlu1 %676  ;;  %v3709_v2 = vpop.permute.xlu0 %665 }
  0xa7   : > { %882 = vbcast.lane.b32.xlu1 %v3705_v35, 256  ;;  %604 = vbcast.lane.b32.xlu0 %v3586_v63, 264  ;;  %v4616_v63 = vrot.slane %v3456_v25, %v3407_v10 }
  0xa9   : > { %v395_v54 = vpop.permute.xlu1 %394  ;;  %v330_v3 = vpop.permute.xlu0 %329 }
  0xab   : > { %966 = vbcast.lane.b32.xlu1 %v3401_v8, 264  ;;  %955 = vbcast.lane.b32.xlu0 %v3392_v6, 264 }
  0xad   : > { %v3721_v57 = vpop.permute.xlu1 %1020  ;;  %v406_v0 = vpop.permute.xlu0 %405 }
  0xaf   : > { %615 = vbcast.lane.b32.xlu1 %v3606_v42, 264  ;;  %1623 = vbcast.lane.b32.xlu0 %v4616_v63, 256  ;;  %v1240_v42 = vrot.slane %v3428_v17, %v3410_v12  ;;  %v3749_v63 = vld [vmem:[%s4565_s1] ss:$0 sm:$0xff] }
  0xb0   : > { %v934_v4 = vmul.f32 %v3749_v63, %v460_v38  ;;  %v3786_v38 = vld [vmem:[%s4565_s1 + $0x3] ss:$0 sm:$0xff]  ;;  %v372_v56 = vmul.f32 %v3749_v63, %v330_v3 }
  0xb1   : > { %v417_v33 = vpop.permute.xlu1 %416  ;;  %v3727_v35 = vpop.permute.xlu0 %1031 }
  0xb3   : > { %1386 = vbcast.lane.b32.xlu1 %v3515_v44, 257  ;;  %977 = vbcast.lane.b32.xlu0 %v3421_v15, 264  ;;  %v3744_v44 = vld [vmem:[%s4565_s1 + $0x1] ss:$0 sm:$0xff] }
  0xb4   : > { %v979_v17 = vmul.f32 %v3744_v44, %v952_v31  ;;  %v981_v60 = vmul.f32 %v3744_v44, %v963_v39  ;;  %v938_v31 = vmul.f32 %v3749_v63, %v482_v29  ;;  %v437_v59 = vmul.f32 %v3744_v44, %v395_v54 }
  0xb5   : > { %v3731_v11 = vpop.permute.xlu1 %535  ;;  %v3733_v62 = vpop.permute.xlu0 %1042  ;;  %v439_v29 = vmul.f32 %v3744_v44, %v406_v0  ;;  %v374_v54 = vmul.f32 %v3749_v63, %v3689_v14  ;;  %v3812_v0 = vld [vmem:[%s4565_s1 + $0x5] ss:$0 sm:$0xff] }
  0xb6   : > { %v985_v52 = vadd.f32 %v979_v17, %v934_v4  ;;  %v441_v17 = vmul.f32 %v3744_v44, %v417_v33  ;;  %v1007_v33 = vmul.f32 %v3786_v38, %v3707_v32  ;;  %v445_v39 = vadd.f32 %v437_v59, %v372_v56 }
  0xb7   : > { %658 = vbcast.lane.b32.xlu1 %v3483_v34, 264  ;;  %1394 = vbcast.lane.b32.xlu0 %v3461_v26, 257  ;;  %v447_v28 = vadd.f32 %v439_v29, %v374_v54 }
  0xb8   : > { %v997_v3 = vadd.f32 %v991_v1, %v985_v52  ;;  %v995_v52 = vmul.f32 %v3760_v5, %v3697_v30  ;;  %v510_v54 = vadd.f32 %v502_v13, %v445_v39 }
  0xb9   : > { %v428_v10 = vpop.permute.xlu1 %427  ;;  %v3739_v25 = vpop.permute.xlu0 %546 }
  0xbb   : > { %1242 = vbcast.lane.b32.xlu1 %v1240_v42, 256  ;;  %669 = vbcast.lane.b32.xlu0 %v3506_v41, 264  ;;  %v936_v42 = vmul.f32 %v3749_v63, %v3678_v45  ;;  %v983_v41 = vmul.f32 %v3744_v44, %v974_v50  ;;  %v443_v50 = vmul.f32 %v3744_v44, %v428_v10 }
  0xbc   : > { %v993_v10 = vmul.f32 %v3760_v5, %v3687_v55 }
  0xbd   : > { %v3752_v26 = vpop.permute.xlu1 %524  ;;  %v3754_v34 = vpop.permute.xlu0 %557  ;;  %v989_v4 = vadd.f32 %v983_v41, %v938_v31  ;;  %v1005_v31 = vmul.f32 %v3786_v38, %v3709_v2 }
  0xbe   : > { %v1064_v13 = vmul.f32 %v3812_v0, %v3754_v34 }
  0xbf   : > { %366 = vbcast.lane.b32.xlu1 %v3490_v36, 264  ;;  %1402 = vbcast.lane.b32.xlu0 %v3434_v19, 257  ;;  %v504_v19 = vmul.f32 %v3760_v5, %v3678_v45  ;;  %v987_v36 = vadd.f32 %v981_v60, %v936_v42  ;;  %v376_v60 = vmul.f32 %v3749_v63, %v3687_v55 }
  0xc0   : > { %v378_v45 = vmul.f32 %v3749_v63, %v3697_v30  ;;  %v1003_v55 = vmul.f32 %v3786_v38, %v3695_v51  ;;  %v573_v30 = vmul.f32 %v3786_v38, %v3754_v34  ;;  %v1001_v18 = vadd.f32 %v995_v52, %v989_v4 }
  0xc1   : > { %v3773_v58 = vpop.permute.xlu1 %860  ;;  %v3775_v37 = vpop.permute.xlu0 %849  ;;  %v449_v12 = vadd.f32 %v441_v17, %v376_v60 }
  0xc2   : > { %v451_v1 = vadd.f32 %v443_v50, %v378_v45  ;;  %v999_v45 = vadd.f32 %v993_v10, %v987_v36  ;;  %v3841_v36 = vmul.f32 %v3812_v0, %v3707_v32  ;;  %v512_v10 = vadd.f32 %v504_v19, %v447_v28 }
  0xc3   : > { %680 = vbcast.lane.b32.xlu1 %v3502_v40, 264  ;;  %431 = vbcast.lane.b32.xlu0 %v3546_v53, 264  ;;  %v3804_v40 = vld [vmem:[%s4565_s1 + $0x4] ss:$0 sm:$0xff]  ;;  %v1062_v28 = vmul.f32 %v3812_v0, %v3739_v25 }
  0xc4   : > { %v1048_v53 = vmul.f32 %v3804_v40, %v3721_v57  ;;  %v1050_v56 = vmul.f32 %v3804_v40, %v3727_v35  ;;  %v1060_v57 = vmul.f32 %v3812_v0, %v3731_v11  ;;  %v1011_v60 = vadd.f32 %v1005_v31, %v999_v45 }
  0xc5   : > { %v3807_v42 = vpop.permute.xlu1 %871  ;;  %v493_v41 = vpop.permute.xlu0 %492  ;;  %v1013_v35 = vadd.f32 %v1007_v33, %v1001_v18  ;;  %v1052_v32 = vmul.f32 %v3804_v40, %v3733_v62  ;;  %v571_v62 = vmul.f32 %v3786_v38, %v3739_v25 }
  0xc6   : > { %v508_v14 = vmul.f32 %v3760_v5, %v493_v41  ;;  %v3831_v41 = vmul.f32 %v3812_v0, %v3695_v51  ;;  %v3845_v51 = vmul.f32 %v3812_v0, %v3709_v2  ;;  %v1056_v17 = vadd.f32 %v1050_v56, %v1011_v60 }
  0xc7   : > { %1442 = vbcast.lane.b32.xlu1 %v3524_v47, 257  ;;  %1434 = vbcast.lane.b32.xlu0 %v3512_v43, 257  ;;  %v1009_v43 = vadd.f32 %v1003_v55, %v997_v3  ;;  %v514_v3 = vadd.f32 %v506_v20, %v449_v12  ;;  %v569_v55 = vmul.f32 %v3786_v38, %v3731_v11 }
  0xc8   : > { %v516_v50 = vadd.f32 %v508_v14, %v451_v1  ;;  %v1550_v12 = vmul.f32 %v3749_v63, %v3773_v58  ;;  %v1552_v45 = vmul.f32 %v3749_v63, %v3807_v42 }
  0xc9   : > { %v601_v47 = vpop.permute.xlu1 %600  ;;  %v590_v59 = vpop.permute.xlu0 %589  ;;  %v1054_v4 = vadd.f32 %v1048_v53, %v1009_v43  ;;  %v1548_v53 = vmul.f32 %v3749_v63, %v3775_v37  ;;  %v577_v19 = vadd.f32 %v569_v55, %v512_v10  ;;  %v579_v10 = vadd.f32 %v571_v62, %v514_v3 }
  0xca   : > { %v3837_v29 = vadd.f32 %v573_v30, %v516_v50  ;;  %v632_v20 = vmul.f32 %v3804_v40, %v590_v59  ;;  %v3892_v30 = vld [vmem:[%s4565_s1 + $0x8] ss:$0 sm:$0xff]  ;;  %v1068_v59 = vadd.f32 %v1062_v28, %v1056_v17  ;;  %v634_v43 = vmul.f32 %v3804_v40, %v601_v47 }
  0xcb   : > { %1490 = vbcast.lane.b32.xlu1 %v3405_v9, 257  ;;  %1482 = vbcast.lane.b32.xlu0 %v3396_v7, 257  ;;  %v1066_v1 = vadd.f32 %v1060_v57, %v1054_v4  ;;  %v567_v9 = vmul.f32 %v3786_v38, %v3752_v26  ;;  %v3858_v7 = vld [vmem:[%s4565_s1 + $0x6] ss:$0 sm:$0xff]  ;;  %v3878_v26 = vld [vmem:[%s4565_s1 + $0x7] ss:$0 sm:$0xff]  ;;  %v892_v17 = vmul.f32 %v3892_v30, %v3775_v37 }
  0xcc   : > { %v1072_v25 = vmul.f32 %v3858_v7, %v3775_v37  ;;  %v1074_v50 = vmul.f32 %v3858_v7, %v3773_v58 }
  0xcd   : > { %v1101_v52 = vpop.permute.xlu1 %1100  ;;  %v1090_v2 = vpop.permute.xlu0 %1089  ;;  %v575_v31 = vadd.f32 %v567_v9, %v510_v54  ;;  %v3908_v54 = vmul.f32 %v3892_v30, %v3773_v58 }
  0xce   : > { %v1562_v18 = vmul.f32 %v3744_v44, %v1101_v52  ;;  %v1560_v11 = vmul.f32 %v3744_v44, %v1090_v2  ;;  %v1117_v57 = vmul.f32 %v3878_v26, %v1090_v2  ;;  %v1119_v47 = vmul.f32 %v3878_v26, %v1101_v52 }
  0xcf   : > { %734 = vbcast.lane.b32.xlu1 %v3441_v21, 264  ;;  %723 = vbcast.lane.b32.xlu0 %v3445_v22, 264  ;;  %v3885_v21 = vld [vmem:[%s4567_s3 + $0x30] sm:$0xff]   ;;  %v1058_v22 = vadd.f32 %v1052_v32, %v1013_v35  ;;  %v640_v35 = vadd.f32 %v632_v20, %v575_v31  ;;  %v1078_v55 = vadd.f32 %v1072_v25, %v1066_v1 }
  0xd0   : > { %v3880_v39 = vadd.f32 %v1562_v18, %v1550_v12  ;;  %v1566_v34 = vadd.f32 %v1560_v11, %v1548_v53  ;;  %3035 = vmatprep.subr.bf16.mxu1 %v3885_v21  ;;  %v642_v12 = vadd.f32 %v634_v43, %v577_v19  ;;  %v1188_v52 = vmul.f32 %v3760_v5, %v3775_v37 }
  0xd1   : > { %v1112_v14 = vpop.permute.xlu1 %1111  ;;  %v612_v33 = vpop.permute.xlu0 %611  ;;  %v1070_v60 = vadd.f32 %v1064_v13, %v1058_v22  ;;  %v1123_v18 = vadd.f32 %v1117_v57, %v1078_v55  ;;  %v705_v1 = vadd.f32 %v3831_v41, %v640_v35  ;;  %v3934_v41 = vld [vmem:[%s4566_s2] ss:$0 sm:$0xff] }
  0xd2   : > { %v1564_v56 = vmul.f32 %v3744_v44, %v1112_v14  ;;  %v636_v53 = vmul.f32 %v3804_v40, %v612_v33  ;;  %v1121_v35 = vmul.f32 %v3878_v26, %v1112_v14 }
  0xd3   : > { %1498 = vbcast.lane.b32.xlu1 %v3425_v16, 257  ;;  %1450 = vbcast.lane.b32.xlu0 %v3529_v48, 257  ;;  %v1076_v16 = vmul.f32 %v3858_v7, %v3807_v42  ;;  %v1080_v48 = vadd.f32 %v1074_v50, %v1068_v59 }
  0xd4   : > { %v3904_v4 = vadd.f32 %v1564_v56, %v1552_v45  ;;  %v644_v56 = vadd.f32 %v636_v53, %v579_v10 }
  0xd5   : > { %v731_v32 = vpop.permute.xlu1 %730  ;;  %v720_v2 = vpop.permute.xlu0 %719  ;;  %v1125_v62 = vadd.f32 %v1119_v47, %v1080_v48  ;;  %v1082_v33 = vadd.f32 %v1076_v16, %v1070_v60 }
  0xd6   : > { %v1129_v9 = vmul.f32 %v3892_v30, %v731_v32  ;;  %v1572_v3 = vmul.f32 %v3760_v5, %v731_v32  ;;  %v762_v28 = vmul.f32 %v3858_v7, %v720_v2  ;;  %v764_v13 = vmul.f32 %v3858_v7, %v731_v32 }
  0xd7   : > { %745 = vbcast.lane.b32.xlu1 %v3453_v24, 264  ;;  %496 = vbcast.lane.b32.xlu0 %v3580_v61, 264  ;;  %v1156_v20 = vmul.f32 %v3749_v63, %v720_v2  ;;  %v1158_v55 = vmul.f32 %v3749_v63, %v731_v32 }
  0xd8   : > { %v3924_v11 = vadd.f32 %v1572_v3, %v1566_v34  ;;  %v1135_v19 = vadd.f32 %v1129_v9, %v1123_v18  ;;  %v770_v24 = vadd.f32 %v762_v28, %v705_v1  ;;  %v707_v34 = vadd.f32 %v3845_v51, %v642_v12 }
  0xd9   : > { %v785_v22 = vpop.permute.xlu1 %784  ;;  %v742_v25 = vpop.permute.xlu0 %741  ;;  %v709_v9 = vadd.f32 %v3841_v36, %v644_v56  ;;  %v1127_v18 = vadd.f32 %v1121_v35, %v1082_v33 }
  0xda   : > { %v827_v31 = vmul.f32 %v3878_v26, %v785_v22  ;;  %v1172_v50 = vmul.f32 %v3744_v44, %v785_v22  ;;  %v1131_v37 = vmul.f32 %v3892_v30, %v742_v25  ;;  %v1574_v45 = vmul.f32 %v3760_v5, %v742_v25 }
  0xdb   : > { %1675 = vbcast.lane.b32.xlu1 %v3401_v8, 257  ;;  %1667 = vbcast.lane.b32.xlu0 %v3392_v6, 257  ;;  %v1141_v51 = vadd.f32 %v3934_v41, %v1135_v19  ;;  %v766_v8 = vmul.f32 %v3858_v7, %v742_v25  ;;  %v772_v16 = vadd.f32 %v764_v13, %v707_v34  ;;  %v4618_v34 = vld [vmem:[#allocation5_spill] sm:$0xff] }
  0xdc   : > { %v835_v59 = vadd.f32 %v827_v31, %v770_v24  ;;  %v1180_v43 = vadd.f32 %v1172_v50, %v1156_v20  ;;  %v1137_v57 = vadd.f32 %v1131_v37, %v1125_v62  ;;  %v3946_v60 = vadd.f32 %v1574_v45, %v3880_v39  ;;  %v4617_v37 = vld [vmem:[#allocation6_spill] sm:$0xff] }
  0xdd   : > { %v3941_v47 = vpop.permute.xlu1 %622  ;;  %v796_v2 = vpop.permute.xlu0 %795  ;;  %v1190_v39 = vmul.f32 %v3760_v5, %v3773_v58  ;;  %v774_v53 = vadd.f32 %v766_v8, %v709_v9  ;;  %v4619_v33 = vrot.slane %v4617_v37, %v4618_v34  ;;  %v1192_v9 = vmul.f32 %v3760_v5, %v3807_v42  ;;  %v4044_v37 = vld [vmem:[%s4567_s3 + $0x40] sm:$0xff]  }
  0xde   : > { %v829_v6 = vmul.f32 %v3878_v26, %v796_v2  ;;  %v1174_v10 = vmul.f32 %v3744_v44, %v796_v2  ;;  %v900_v48 = vadd.f32 %v892_v17, %v835_v59  ;;  %v1143_v14 = vadd.f32 %v3934_v41, %v1137_v57 }
  0xdf   : > { %799 = vbcast.lane.b32.xlu1 %v3465_v27, 264  ;;  %788 = vbcast.lane.b32.xlu0 %v3449_v23, 264  ;;  %v3954_v32 = vadd.f32 %v1188_v52, %v1180_v43  ;;  %v1160_v17 = vmul.f32 %v3749_v63, %v742_v25  ;;  %v3962_v27 = vmax.f32 %v1141_v51, 0.0 }
  0xe0   : > { %v837_v3 = vadd.f32 %v829_v6, %v772_v16  ;;  %v1182_v12 = vadd.f32 %v1174_v10, %v1158_v55  ;;  %v3964_v23 = vmax.f32 %v1143_v14, 0.0  ;;  %v914_v20 = vadd.f32 %v3934_v41, %v900_v48  ;;  %v4620_v6 = vld [vmem:[#allocation7_spill] sm:$0xff] }
  0xe1   : > { %v807_v28 = vpop.permute.xlu1 %806  ;;  %v3960_v1 = vpop.permute.xlu0 %752  ;;  %v4621_v14 = vld [vmem:[#allocation11_spill] sm:$0xff] }
  0xe2   : > { %v902_v52 = vadd.f32 %v3908_v54, %v837_v3  ;;  %v831_v62 = vmul.f32 %v3878_v26, %v807_v28  ;;  %v1176_v58 = vmul.f32 %v3744_v44, %v807_v28  ;;  %v1133_v36 = vmul.f32 %v3892_v30, %v3960_v1 }
  0xe3   : > { %1035 = vbcast.lane.b32.xlu1 %v3532_v49, 264  ;;  %1024 = vbcast.lane.b32.xlu0 %v3521_v46, 264  ;;  %v2943_v13 = vpack.c.bf16 %v3964_v23, %v3962_v27  ;;  %v896_v54 = vmul.f32 %v3892_v30, %v3807_v42  ;;  %v3982_v50 = vadd.f32 %v1190_v39, %v1182_v12  ;;  %v3988_v45 = vmax.f32 %v914_v20, 0.0  ;;  %v3169_v42 = vld [vmem:[%s4567_s3 + $0x28] sm:$0xff]   ;;  %v3171_v20 = vld [vmem:[%s4567_s3 + $0x38] sm:$0xff]  }
  0xe4   : > { %v839_v22 = vadd.f32 %v831_v62, %v774_v53  ;;  %v1184_v25 = vadd.f32 %v1176_v58, %v1160_v17  ;;  %v1139_v19 = vadd.f32 %v1133_v36, %v1127_v18  ;;  %v916_v49 = vadd.f32 %v3934_v41, %v902_v52  ;;  %v4622_v53 = vld [vmem:[#allocation13_spill] sm:$0xff] }
  0xe5   : > { %3015 = vmatprep.mubr.msk.bf16.mxu0 %vm1756_vm0, %v2943_v13  ;;  %v3979_v24 = vpop.permute.xlu1 %344  ;;  %v334_v31 = vpop.permute.xlu0 %333  ;;  %v1576_v3 = vmul.f32 %v3760_v5, %v3960_v1  ;;  %v4623_v62 = vld [vmem:[#allocation21_spill] sm:$0xff] }
  0xe6   : > { %v904_v46 = vadd.f32 %v896_v54, %v839_v22  ;;  %v3990_v56 = vmax.f32 %v916_v49, 0.0  ;;  %v1145_v55 = vadd.f32 %v3934_v41, %v1139_v19  ;;  %v373_v2 = vmul.f32 %v3749_v63, %v334_v31  ;;  %v4624_v13 = vld [vmem:[#allocation9_spill] sm:$0xff]  ;;  %v4625_v31 = vld [vmem:[#allocation24_spill] sm:$0xff] }
  0xe7   : > { %1683 = vbcast.lane.b32.xlu1 %v3421_v15, 257  ;;  %1302 = vbcast.lane.b32.xlu0 %v4619_v33, 256  ;;  %v375_v15 = vmul.f32 %v3749_v63, %v3979_v24  ;;  %v1360_v58 = vrot.slane %v4623_v62, %v4618_v34  ;;  %v1200_v36 = vadd.f32 %v1192_v9, %v1184_v25  ;;  %v4626_v34 = vld [vmem:[#allocation12_spill] sm:$0xff] }
  0xe8   : > { %v918_v59 = vadd.f32 %v3934_v41, %v904_v46  ;;  %v2945_v35 = vpack.c.bf16 %v3990_v56, %v3988_v45  ;;  %v1151_v39 = vmax.f32 %v1145_v55, 0.0  ;;  %v4033_v25 = vadd.f32 %v1576_v3, %v3904_v4  ;;  %v4631_v3 = vld [vmem:[#allocation15_spill] sm:$0xff] }
  0xe9   : > { %v410_v43 = vpop.permute.xlu1 %409  ;;  %v399_v57 = vpop.permute.xlu0 %398 }
  0xea   : > { %v440_v51 = vmul.f32 %v3744_v44, %v410_v43  ;;  %v438_v8 = vmul.f32 %v3744_v44, %v399_v57  ;;  %v926_v16 = vmax.f32 %v918_v59, 0.0  ;;  %3023 = vmatprep.mubr.msk.bf16.mxu1 %vm1756_vm0, %v2945_v35  ;;  %v4012_v28 = vpack.c.bf16 %v1151_v39, %v1151_v39  ;;  %v4627_v57 = vld [vmem:[#allocation18_spill] sm:$0xff] }
  0xeb   : > { %810 = vbcast.lane.b32.xlu1 %v4620_v6, 264  ;;  %561 = vbcast.lane.b32.xlu0 %v4621_v14, 264  ;;  %v4630_v14 = vld [vmem:[#allocation14_spill] sm:$0xff] }
  0xec   : > { %v448_v10 = vadd.f32 %v440_v51, %v375_v15  ;;  %v446_v48 = vadd.f32 %v438_v8, %v373_v2  ;;  %v4014_v17 = vpack.c.bf16 %v926_v16, %v926_v16  ;;  %v2947_v52 = vpack.c.bf16 %v926_v16, %v3990_v56  ;;  %3016 = vmatmul.mubr.msk.bf16.vlgmr.msra.gmra.mrb[0].mxu0 %vm1756_vm0, %v4012_v28  ;;  %v4629_v8 = vld [vmem:[#allocation20_spill] sm:$0xff] }
  0xed   : > { %v4008_v12 = vpop.permute.xlu1 %355  ;;  %v4010_v18 = vpop.permute.xlu0 %687  ;;  %3028 = vmatpush3.bf16.msra.mxu0 %v4625_v31 }
  0xee   : > { %3024 = vmatmul.mubr.msk.bf16.vlgmr.msra.gmra.mrb[0].mxu1 %vm1756_vm0, %v4014_v17  ;;  %3031 = vmatprep.mubr.msk.bf16.mxu0 %vm1756_vm0, %v2947_v52  ;;  %v377_v49 = vmul.f32 %v3749_v63, %v4008_v12 }
  0xef   : > { %853 = vbcast.lane.b32.xlu1 %v4622_v53, 264  ;;  %1046 = vbcast.lane.b32.xlu0 %v4624_v13, 264  ;;  %v4632_v53 = vld [vmem:[#allocation16_spill] sm:$0xff]  ;;  %v4634_v13 = vld [vmem:[#allocation10_spill] sm:$0xff] }
  0xf0   : > { %3036 = vmatpush3.bf16.msra.mxu1 %v3885_v21  ;;  %3029 = vmatprep.subr.bf16.mxu0 %v3169_v42 }
  0xf1   : > { %v1210_v54 = vpop.permute.xlu1 %1209  ;;  %v421_v22 = vpop.permute.xlu0 %420  ;;  %3037 = vmatprep.subr.bf16.mxu1 %v3171_v20  ;;  %3030 = vmatpush3.bf16.msra.mxu0 %v3169_v42 }
  0xf2   : > { %v1248_v19 = vmul.f32 %v3786_v38, %v1210_v54  ;;  %v442_v46 = vmul.f32 %v3744_v44, %v421_v22  ;;  %3043 = vmatprep.subr.bf16.mxu0 %v4044_v37 }
  0xf3   : > { %1362 = vbcast.lane.b32.xlu1 %v1360_v58, 256  ;;  %864 = vbcast.lane.b32.xlu0 %v4626_v34, 264 }
  0xf4   : > { %v4047_v4 = vadd.f32 %v1248_v19, %v3954_v32  ;;  %v450_v33 = vadd.f32 %v442_v46, %v377_v49  ;;  %3038 = vmatpush3.bf16.msra.mxu1 %v3171_v20  ;;  %v4628_v32 = vld [vmem:[#allocation8_spill] sm:$0xff]  ;;  %v4635_v46 = vld [vmem:[#allocation17_spill] sm:$0xff] }
  0xf5   : > { %v4050_v21 = vpop.permute.xlu1 %463  ;;  %v4052_v59 = vpop.permute.xlu0 %1220 }
  0xf6   : > { %v503_v43 = vmul.f32 %v3760_v5, %v4050_v21 }
  0xf7   : > { %626 = vbcast.lane.b32.xlu1 %v4627_v57, 264  ;;  %1410 = vbcast.lane.b32.xlu0 %v4628_v32, 257 }
  0xf8   : > { %v511_v35 = vadd.f32 %v503_v43, %v446_v48  ;;  %v1162_v43 = vmul.f32 %v3749_v63, %v3960_v1 }
  0xf9   : > { %v1232_v55 = vpop.permute.xlu1 %1231  ;;  %v4059_v15 = vpop.permute.xlu0 %474 }
  0xfa   : > { %v1252_v2 = vmul.f32 %v3786_v38, %v1232_v55  ;;  %v505_v51 = vmul.f32 %v3760_v5, %v4059_v15 }
  0xfb   : > { %691 = vbcast.lane.b32.xlu1 %v4629_v8, 264  ;;  %875 = vbcast.lane.b32.xlu0 %v4630_v14, 264 }
  0xfc   : > { %v4065_v16 = vadd.f32 %v1252_v2, %v1200_v36  ;;  %v513_v6 = vadd.f32 %v505_v51, %v448_v10  ;;  %v4633_v36 = vld [vmem:[#allocation19_spill] sm:$0xff]  ;;  %v4637_v2 = vld [vmem:[#allocation22_spill] sm:$0xff]  ;;  %v638_v51 = vmul.f32 %v3804_v40, %v3941_v47 }
  0xfd   : > { %v4068_v39 = vpop.permute.xlu1 %1269  ;;  %v4070_v48 = vpop.permute.xlu0 %485 }
  0xfe   : > { %v507_v9 = vmul.f32 %v3760_v5, %v4070_v48 }
  0xff   : > { %1104 = vbcast.lane.b32.xlu1 %v4631_v3, 264  ;;  %1093 = vbcast.lane.b32.xlu0 %v4632_v53, 264  ;;  %v703_v3 = vmul.f32 %v3812_v0, %v4010_v18  ;;  %v768_v18 = vmul.f32 %v3858_v7, %v3960_v1 }
 0x100   : > { %v515_v52 = vadd.f32 %v507_v9, %v450_v33 }
 0x101   : > { %v4076_v62 = vpop.permute.xlu1 %1329  ;;  %v4078_v58 = vpop.permute.xlu0 %1280 }
 0x102   : > { %v1584_v10 = vmul.f32 %v3786_v38, %v4076_v62 }
 0x103   : > { %756 = vbcast.lane.b32.xlu1 %v4633_v36, 264  ;;  %1458 = vbcast.lane.b32.xlu0 %v4634_v13, 257 }
 0x104   : > { %v1590_v42 = vadd.f32 %v1584_v10, %v3924_v11  ;;  %v4096_v11 = vld [vmem:[%s4567_s3 + $0x50] sm:$0xff]   ;;  %v646_v10 = vadd.f32 %v638_v51, %v3837_v29  ;;  %v1643_v51 = vmul.f32 %v3812_v0, %v1232_v55  ;;  %v935_v55 = vmul.f32 %v3749_v63, %v4050_v21 }
 0x105   : > { %v529_v20 = vpop.permute.xlu1 %528  ;;  %v4085_v54 = vpop.permute.xlu0 %1340  ;;  %3051 = vmatprep.subr.bf16.mxu1 %v4096_v11 }
 0x106   : > { %v568_v22 = vmul.f32 %v3786_v38, %v529_v20  ;;  %v1586_v19 = vmul.f32 %v3786_v38, %v4085_v54  ;;  %v711_v20 = vadd.f32 %v703_v3, %v646_v10 }
 0x107   : > { %1506 = vbcast.lane.b32.xlu1 %v3580_v61, 257  ;;  %1115 = vbcast.lane.b32.xlu0 %v4635_v46, 264 }
 0x108   : > { %v576_v31 = vadd.f32 %v568_v22, %v511_v35  ;;  %v1592_v49 = vadd.f32 %v1586_v19, %v3946_v60  ;;  %v4636_v60 = vld [vmem:[#allocation23_spill] sm:$0xff]  ;;  %v1641_v22 = vmul.f32 %v3812_v0, %v4052_v59 }
 0x109   : > { %v818_v34 = vpop.permute.xlu1 %817  ;;  %v4098_v33 = vpop.permute.xlu0 %539 }
 0x10a   : > { %v1178_v57 = vmul.f32 %v3744_v44, %v818_v34  ;;  %v570_v61 = vmul.f32 %v3786_v38, %v4098_v33 }
 0x10b   : > { %886 = vbcast.lane.b32.xlu1 %v4636_v60, 264  ;;  %821 = vbcast.lane.b32.xlu0 %v4637_v2, 264  ;;  %v776_v2 = vadd.f32 %v768_v18, %v711_v20  ;;  %v937_v20 = vmul.f32 %v3749_v63, %v4059_v15 }
 0x10c   : > { %v1186_v35 = vadd.f32 %v1178_v57, %v1162_v43  ;;  %v578_v32 = vadd.f32 %v570_v61, %v513_v6 }
 0x10d   : > { %v4110_v8 = vpop.permute.xlu1 %1351  ;;  %v4112_v14 = vpop.permute.xlu0 %1291 }
 0x10e   : > { %v1588_v9 = vmul.f32 %v3786_v38, %v4110_v8 }
 0x110   : > { %v1594_v53 = vadd.f32 %v1588_v9, %v4033_v25  ;;  %v833_v25 = vmul.f32 %v3878_v26, %v818_v34 }
 0x111   : > { %v1602_v6 = vpop.permute.xlu1 %1601  ;;  %v4120_v36 = vpop.permute.xlu0 %550 }
 0x112   : > { %v1629_v13 = vmul.f32 %v3804_v40, %v1602_v6  ;;  %v572_v47 = vmul.f32 %v3786_v38, %v4120_v36 }
 0x114   : > { %v1635_v19 = vadd.f32 %v1629_v13, %v1590_v42  ;;  %v580_v46 = vadd.f32 %v572_v47, %v515_v52  ;;  %v841_v52 = vadd.f32 %v833_v25, %v776_v2 }
 0x115   : > { %v594_v29 = vpop.permute.xlu1 %593  ;;  %v1613_v43 = vpop.permute.xlu0 %1612 }
 0x116   : > { %v4130_v57 = vadd.f32 %v1641_v22, %v1635_v19  ;;  %v633_v61 = vmul.f32 %v3804_v40, %v594_v29  ;;  %v1631_v60 = vmul.f32 %v3804_v40, %v1613_v43  ;;  %v992_v43 = vmul.f32 %v3760_v5, %v3979_v24 }
 0x118   : > { %v4135_v9 = vadd.f32 %v633_v61, %v576_v31  ;;  %v1637_v42 = vadd.f32 %v1631_v60, %v1592_v49 }
 0x119   : > { %v883_v3 = vpop.permute.xlu1 %882  ;;  %v605_v10 = vpop.permute.xlu0 %604 }
 0x11a   : > { %v4137_v1 = vadd.f32 %v1643_v51, %v1637_v42  ;;  %v898_v34 = vmul.f32 %v3892_v30, %v883_v3  ;;  %v1194_v6 = vmul.f32 %v3760_v5, %v883_v3  ;;  %v635_v13 = vmul.f32 %v3804_v40, %v605_v10  ;;  %v3173_v3 = vld [vmem:[%s4567_s3 + $0x48] sm:$0xff]  }
 0x11c   : > { %v906_v47 = vadd.f32 %v898_v34, %v841_v52  ;;  %v1202_v22 = vadd.f32 %v1194_v6, %v1186_v35  ;;  %v4142_v19 = vadd.f32 %v635_v13, %v578_v32  ;;  %v994_v35 = vmul.f32 %v3760_v5, %v4008_v12 }
 0x11d   : > { %v967_v31 = vpop.permute.xlu1 %966  ;;  %v956_v49 = vpop.permute.xlu0 %955  ;;  %v939_v6 = vmul.f32 %v3749_v63, %v4070_v48 }
 0x11e   : > { %v920_v18 = vadd.f32 %v3934_v41, %v906_v47  ;;  %v982_v25 = vmul.f32 %v3744_v44, %v967_v31  ;;  %v980_v29 = vmul.f32 %v3744_v44, %v956_v49 }
 0x120   : > { %v928_v32 = vmax.f32 %v920_v18, 0.0  ;;  %v988_v61 = vadd.f32 %v982_v25, %v937_v20  ;;  %v986_v21 = vadd.f32 %v980_v29, %v935_v55  ;;  %v1250_v25 = vmul.f32 %v3786_v38, %v4052_v59 }
 0x121   : > { %v616_v60 = vpop.permute.xlu1 %615  ;;  %v1624_v2 = vpop.permute.xlu0 %1623  ;;  %v1308_v29 = vmul.f32 %v3804_v40, %v4068_v39 }
 0x122   : > { %v4155_v51 = vpack.c.bf16 %v928_v32, %v928_v32  ;;  %v4157_v15 = vadd.f32 %v994_v35, %v988_v61  ;;  %v998_v42 = vadd.f32 %v992_v43, %v986_v21  ;;  %v637_v52 = vmul.f32 %v3804_v40, %v616_v60 }
 0x123   : > { %v1633_v24 = vmul.f32 %v3804_v40, %v1624_v2  ;;  %v1310_v43 = vmul.f32 %v3804_v40, %v4078_v58  ;;  %v1368_v61 = vmul.f32 %v3812_v0, %v4076_v62  ;;  %v1370_v21 = vmul.f32 %v3812_v0, %v4085_v54 }
 0x124   : > { %v4164_v10 = vadd.f32 %v637_v52, %v580_v46  ;;  %3032 = vmatmul.mubr.msk.bf16.vlgmr.msra.gmra.mrb[4].mxu0 %vm1756_vm0, %v4155_v51  ;;  %v4177_v46 = vld [vmem:[%s4567_s3 + $0x60] sm:$0xff]   ;;  %v1316_v59 = vadd.f32 %v1308_v29, %v4047_v4  ;;  %v1312_v62 = vmul.f32 %v3804_v40, %v4112_v14 }
 0x125   : > { %v4168_v5 = vadd.f32 %v1633_v24, %v1594_v53  ;;  %v1387_v12 = vpop.permute.xlu1 %1386  ;;  %v978_v34 = vpop.permute.xlu0 %977  ;;  %3044 = vmatpush3.bf16.msra.mxu0 %v4044_v37 }
 0x126   : > { %v984_v13 = vmul.f32 %v3744_v44, %v978_v34  ;;  %3045 = vmatprep.subr.bf16.mxu0 %v3173_v3  ;;  %v1416_v39 = vmul.f32 %v3858_v7, %v1387_v12  ;;  %v1376_v52 = vadd.f32 %v1368_v61, %v1316_v59  ;;  %v1320_v29 = vadd.f32 %v1312_v62, %v4065_v16 }
 0x128   : > { %v4179_v47 = vadd.f32 %v984_v13, %v939_v6  ;;  %v1424_v54 = vadd.f32 %v1416_v39, %v1376_v52 }
 0x129   : > { %v4181_v55 = vpop.permute.xlu1 %658  ;;  %v4183_v53 = vpop.permute.xlu0 %1394  ;;  %3046 = vmatpush3.bf16.msra.mxu0 %v3173_v3 }
 0x12a   : > { %v1004_v37 = vmul.f32 %v3786_v38, %v4181_v55  ;;  %3059 = vmatprep.subr.bf16.mxu0 %v4177_v46  ;;  %v1418_v58 = vmul.f32 %v3858_v7, %v4183_v53 }
 0x12c   : > { %v4188_v63 = vadd.f32 %v1004_v37, %v998_v42 }
 0x12d   : > { %v4190_v44 = vpop.permute.xlu1 %1242  ;;  %v4192_v48 = vpop.permute.xlu0 %669 }
 0x12e   : > { %v1254_v31 = vmul.f32 %v3786_v38, %v4190_v44 }
 0x130   : > { %v4196_v49 = vadd.f32 %v1254_v31, %v1202_v22  ;;  %v1258_v22 = vadd.f32 %v1250_v25, %v3982_v50  ;;  %v1372_v25 = vmul.f32 %v3812_v0, %v4110_v8 }
 0x131   : > { %v4198_v20 = vpop.permute.xlu1 %366  ;;  %v4200_v18 = vpop.permute.xlu0 %1402 }
 0x132   : > { %v1318_v60 = vadd.f32 %v1310_v43, %v1258_v22  ;;  %v1380_v39 = vadd.f32 %v1372_v25, %v1320_v29 }
 0x134   : > { %v1378_v3 = vadd.f32 %v1370_v21, %v1318_v60  ;;  %v1420_v21 = vmul.f32 %v3858_v7, %v4200_v18 }
 0x135   : > { %v4208_v35 = vpop.permute.xlu1 %680  ;;  %v4210_v32 = vpop.permute.xlu0 %431 }
 0x136   : > { %v1426_v34 = vadd.f32 %v1418_v58, %v1378_v3  ;;  %v1428_v16 = vadd.f32 %v1420_v21, %v1380_v39 }
 0x139   : > { %v1443_v2 = vpop.permute.xlu1 %1442  ;;  %v1435_v42 = vpop.permute.xlu0 %1434 }
 0x13a   : > { %v1466_v50 = vmul.f32 %v3878_v26, %v1443_v2  ;;  %v1464_v24 = vmul.f32 %v3878_v26, %v1435_v42 }
 0x13c   : > { %v1474_v13 = vadd.f32 %v1466_v50, %v1426_v34  ;;  %v1472_v12 = vadd.f32 %v1464_v24, %v1424_v54 }
 0x13d   : > { %v1491_v4 = vpop.permute.xlu1 %1490  ;;  %v1483_v6 = vpop.permute.xlu0 %1482 }
 0x13e   : > { %v1514_v37 = vmul.f32 %v3892_v30, %v1491_v4  ;;  %v1512_v31 = vmul.f32 %v3892_v30, %v1483_v6  ;;  %v1655_v62 = vmul.f32 %v3858_v7, %v1491_v4 }
 0x140   : > { %v1522_v43 = vadd.f32 %v1514_v37, %v1474_v13  ;;  %v1520_v22 = vadd.f32 %v1512_v31, %v1472_v12  ;;  %v1653_v13 = vmul.f32 %v3858_v7, %v1483_v6  ;;  %v1661_v31 = vadd.f32 %v1655_v62, %v4137_v1  ;;  %v4280_v62 = vld [vmem:[%s4567_s3 + $0x70] sm:$0xff]  }
 0x141   : > { %v4230_v61 = vpop.permute.xlu1 %734  ;;  %v4232_v14 = vpop.permute.xlu0 %723  ;;  %v1701_v6 = vmul.f32 %v3892_v30, %v4183_v53 }
 0x142   : > { %v1530_v59 = vadd.f32 %v3934_v41, %v1522_v43  ;;  %v1528_v60 = vadd.f32 %v3934_v41, %v1520_v22  ;;  %v1659_v43 = vadd.f32 %v1653_v13, %v4130_v57  ;;  %v3177_v57 = vld [vmem:[%s4567_s3 + $0x58] sm:$0xff]  }
 0x144   : > { %v1538_v58 = vmax.f32 %v1530_v59, 0.0  ;;  %v1536_v2 = vmax.f32 %v1528_v60, 0.0  ;;  %v2960_v59 = vpack.c.bf16 %v3962_v27, %v3962_v27  ;;  %v1703_v60 = vmul.f32 %v3892_v30, %v4200_v18 }
 0x145   : > { %v4238_v42 = vpop.permute.xlu1 %1498  ;;  %v1451_v8 = vpop.permute.xlu0 %1450  ;;  %v1006_v27 = vmul.f32 %v3786_v38, %v4192_v48  ;;  %v2955_v18 = vpack.c.bf16 %v3988_v45, %v3988_v45 }
 0x146   : > { %v1516_v52 = vmul.f32 %v3892_v30, %v4238_v42  ;;  %v1468_v3 = vmul.f32 %v3878_v26, %v1451_v8  ;;  %v2949_v50 = vpack.c.bf16 %v1538_v58, %v1536_v2  ;;  %v2343_v13 = vshll.u32 %v2960_v59, 16 }
 0x147   : > { %v1012_v45 = vadd.f32 %v1006_v27, %v4157_v15  ;;  %v1063_v15 = vmul.f32 %v3812_v0, %v4120_v36 }
 0x148   : > { %v1476_v24 = vadd.f32 %v1468_v3, %v1428_v16  ;;  %3039 = vmatprep.mubr.msk.bf16.mxu1 %vm1756_vm0, %v2949_v50  ;;  %v2962_v16 = vpack.c.bf16 %v3964_v23, %v3964_v23 }
 0x149   : > { %v4245_v54 = vpop.permute.xlu1 %745  ;;  %v4247_v34 = vpop.permute.xlu0 %496 }
 0x14a   : > { %v1524_v12 = vadd.f32 %v1516_v52, %v1476_v24 }
 0x14c   : > { %v1532_v37 = vadd.f32 %v3934_v41, %v1524_v12  ;;  %v2354_v12 = vshrl.u32 %v2962_v16, 16 }
 0x14d   : > { %v1676_v25 = vpop.permute.xlu1 %1675  ;;  %v1668_v29 = vpop.permute.xlu0 %1667 }
 0x14e   : > { %v1540_v22 = vmax.f32 %v1532_v37, 0.0  ;;  %v1691_v21 = vmul.f32 %v3878_v26, %v1676_v25  ;;  %v1689_v4 = vmul.f32 %v3878_v26, %v1668_v29  ;;  %v2357_v37 = vshll.u32 %v2962_v16, 16 }
 0x150   : > { %v2950_v39 = vpack.c.bf16 %v1540_v22, %v1540_v22  ;;  %v1697_v1 = vadd.f32 %v1691_v21, %v1661_v31  ;;  %v1695_v2 = vadd.f32 %v1689_v4, %v1659_v43  ;;  %v2953_v8 = vpack.c.bf16 %v1540_v22, %v1538_v58 }
 0x151   : > { %v4268_v52 = vpop.permute.xlu1 %799  ;;  %v789_v53 = vpop.permute.xlu0 %788  ;;  %v2340_v58 = vshrl.u32 %v2960_v59, 16  ;;  %v2957_v21 = vpack.c.bf16 %v3990_v56, %v3990_v56  ;;  %v2213_v4 = vshrl.u32 %v2955_v18, 16  ;;  %v1061_v59 = vmul.f32 %v3812_v0, %v4098_v33 }
 0x152   : > { %v1709_v3 = vadd.f32 %v1703_v60, %v1697_v1  ;;  %v1707_v50 = vadd.f32 %v1701_v6, %v1695_v2  ;;  %3040 = vmatmul.mubr.msk.bf16.vlgmr.msra.gmra.mrb[4].mxu1 %vm1756_vm0, %v2950_v39  ;;  %v2216_v6 = vshll.u32 %v2955_v18, 16  ;;  %v2359_v16 = vrot.slane %v2357_v37, 5 }
 0x153   : > { %3055 = vmatprep.mubr.msk.bf16.mxu1 %vm1756_vm0, %v2953_v8  ;;  %3052 = vmatpush3.bf16.msra.mxu1 %v4096_v11  ;;  %v2342_v2 = vrot.slane %v2340_v58, 4  ;;  %v2356_v8 = vrot.slane %v2354_v12, 4  ;;  %v698_v33 = vmul.f32 %v3812_v0, %v4181_v55  ;;  %v2227_v36 = vshrl.u32 %v2957_v21, 16 }
 0x154   : > { %v1715_v23 = vadd.f32 %v3934_v41, %v1709_v3  ;;  %v1713_v24 = vadd.f32 %v3934_v41, %v1707_v50  ;;  %3053 = vmatprep.subr.bf16.mxu1 %v3177_v57  ;;  %v2218_v50 = vrot.slane %v2216_v6, 5  ;;  %v2230_v18 = vshll.u32 %v2957_v21, 16 }
 0x155   : > { %v1036_v31 = vpop.permute.xlu1 %1035  ;;  %v1025_v25 = vpop.permute.xlu0 %1024  ;;  %v763_v58 = vmul.f32 %v3858_v7, %v4232_v14  ;;  %v2240_v12 = vshrl.u32 %v4014_v17, 16  ;;  %v2243_v55 = vshll.u32 %v4014_v17, 16  ;;  %v706_v37 = vadd.f32 %v698_v33, %v4135_v9 }
 0x156   : > { %v1721_v29 = vmax.f32 %v1715_v23, 0.0  ;;  %v1719_v11 = vmax.f32 %v1713_v24, 0.0  ;;  %v1051_v43 = vmul.f32 %v3804_v40, %v1036_v31  ;;  %v1049_v22 = vmul.f32 %v3804_v40, %v1025_v25 }
 0x157   : > { %3054 = vmatpush3.bf16.msra.mxu1 %v3177_v57  ;;  %v2345_v40 = vrot.slane %v2343_v13, 5  ;;  %v2360_v24 = vor.u32 %v2359_v16, %v2356_v8  ;;  %v700_v25 = vmul.f32 %v3812_v0, %v4192_v48  ;;  %v771_v14 = vadd.f32 %v763_v58, %v706_v37  ;;  %v3188_v8 = vld [vmem:[%s4565_s1 + $0x2] ss:$0 sm:$0xff] }
 0x158   : > { %v1057_v60 = vadd.f32 %v1051_v43, %v1012_v45  ;;  %v1055_v39 = vadd.f32 %v1049_v22, %v4188_v63  ;;  %v2951_v1 = vpack.c.bf16 %v1721_v29, %v1719_v11  ;;  %3067 = vmatprep.subr.bf16.mxu1 %v4280_v62  ;;  %v2215_v63 = vrot.slane %v2213_v4, 4 }
 0x159   : > { %v1684_v56 = vpop.permute.xlu1 %1683  ;;  %v4293_v27 = vpop.permute.xlu0 %1302  ;;  %v2346_v23 = vor.u32 %v2345_v40, %v2342_v2  ;;  %v828_v45 = vmul.f32 %v3878_v26, %v789_v53  ;;  %v2229_v11 = vrot.slane %v2227_v36, 4  ;;  %v2232_v43 = vrot.slane %v2230_v18, 5 }
 0x15a   : > { %v4297_v57 = vadd.f32 %v1063_v15, %v1057_v60  ;;  %v4299_v3 = vadd.f32 %v1061_v59, %v1055_v39  ;;  %3047 = vmatprep.mubr.msk.bf16.mxu0 %vm1756_vm0, %v2951_v1  ;;  %v2219_v29 = vor.u32 %v2218_v50, %v2215_v63  ;;  %v4314_v21 = vrot.slane %v2360_v24, 4 }
 0x15b   : > { %v4312_v22 = vrot.slane %v2346_v23, 4  ;;  %v2367_v4 = vshrl.u32 %v4012_v28, 16  ;;  %v765_v17 = vmul.f32 %v3858_v7, %v4230_v61  ;;  %v4319_v53 = vrot.slane %v2240_v12, 4 }
 0x15c   : > { %v4321_v6 = vrot.slane %v2243_v55, 5  ;;  %v836_v59 = vadd.f32 %v828_v45, %v771_v14  ;;  %v2370_v60 = vshll.u32 %v4012_v28, 16  ;;  %v1645_v39 = vmul.f32 %v3812_v0, %v4190_v44  ;;  %v3189_v45 = vld [vmem:[%s4565_s1 + $0x1] ss:$0 sm:$0xff] }
 0x15d   : > { %v811_v13 = vpop.permute.xlu1 %810  ;;  %v4308_v31 = vpop.permute.xlu0 %561  ;;  %v708_v1 = vadd.f32 %v700_v25, %v4142_v19  ;;  %v830_v2 = vmul.f32 %v3878_v26, %v4268_v52  ;;  %v4332_v40 = vrot.slane %v2219_v29, 4  ;;  %v996_v16 = vmul.f32 %v3188_v8, %v4198_v20 }
 0x15e   : > { %v2233_v36 = vor.u32 %v2232_v43, %v2229_v11  ;;  %v1657_v50 = vmul.f32 %v3858_v7, %v4238_v42  ;;  %v2246_v19 = vor.u32 %v4321_v6, %v4319_v53  ;;  %v702_v52 = vmul.f32 %v3812_v0, %v4208_v35  ;;  %v3196_v53 = vld [vmem:[%s4565_s1 + $0x8] ss:$0 sm:$0xff] }
 0x15f   : > { %v773_v63 = vadd.f32 %v765_v17, %v708_v1  ;;  %v1008_v18 = vmul.f32 %v3786_v38, %v4208_v35  ;;  %v1651_v24 = vadd.f32 %v1645_v39, %v4168_v5  ;;  %v1693_v42 = vmul.f32 %v3878_v26, %v1684_v56  ;;  %v3190_v5 = vld [vmem:[%s4565_s1] ss:$0 sm:$0xff] }
 0x160   : > { %v1002_v37 = vadd.f32 %v996_v16, %v4179_v47  ;;  %v444_v0 = vmul.f32 %v3189_v45, %v4210_v32  ;;  %v4357_v38 = vrot.slane %v2233_v36, 4  ;;  %v379_v35 = vmul.f32 %v3190_v5, %v4198_v20  ;;  %v3192_v45 = vld [vmem:[%s4565_s1 + $0x3] ss:$0 sm:$0xff] }
 0x161   : > { %v854_v9 = vpop.permute.xlu1 %853  ;;  %v4324_v15 = vpop.permute.xlu0 %1046  ;;  %v838_v12 = vadd.f32 %v830_v2, %v773_v63  ;;  %v1663_v56 = vadd.f32 %v1657_v50, %v1651_v24  ;;  %v767_v29 = vmul.f32 %v3858_v7, %v4245_v54  ;;  %v710_v43 = vadd.f32 %v702_v52, %v4164_v10  ;;  %v3191_v10 = vld [vmem:[%s4565_s1 + $0x4] ss:$0 sm:$0xff] }
 0x162   : > { %v893_v48 = vmul.f32 %v3892_v30, %v854_v9  ;;  %v1014_v14 = vadd.f32 %v1008_v18, %v1002_v37  ;;  %v509_v32 = vmul.f32 %v3188_v8, %v4247_v34  ;;  %v832_v39 = vmul.f32 %v3878_v26, %v811_v13  ;;  %v3182_v52 = vld [vmem:[%s4569_s5] sm:$0xff]  }
 0x163   : > { %v452_v2 = vadd.f32 %v444_v0, %v379_v35  ;;  %v1130_v16 = vmul.f32 %v3892_v30, %v4230_v61  ;;  %v775_v8 = vadd.f32 %v767_v29, %v710_v43  ;;  %v1132_v36 = vmul.f32 %v3892_v30, %v4245_v54 }
 0x164   : > { %v901_v33 = vadd.f32 %v893_v48, %v836_v59  ;;  %v1699_v48 = vadd.f32 %v1693_v42, %v1663_v56  ;;  %v1073_v18 = vmul.f32 %v3858_v7, %v854_v9  ;;  %v574_v0 = vmul.f32 %v3192_v45, %v4308_v31  ;;  %v3193_v9 = vld [vmem:[%s4565_s1 + $0x5] ss:$0 sm:$0xff] }
 0x165   : > { %v4340_v44 = vpop.permute.xlu1 %1362  ;;  %v865_v23 = vpop.permute.xlu0 %864  ;;  %v517_v61 = vadd.f32 %v509_v32, %v452_v2 }
 0x166   : > { %v915_v58 = vadd.f32 %v3934_v41, %v901_v33  ;;  %v895_v55 = vmul.f32 %v3892_v30, %v865_v23  ;;  %v1314_v33 = vmul.f32 %v3191_v10, %v4293_v27  ;;  %v1075_v27 = vmul.f32 %v3858_v7, %v865_v23 }
 0x167   : > { %v1065_v7 = vmul.f32 %v3193_v9, %v4308_v31  ;;  %v1079_v56 = vadd.f32 %v1073_v18, %v4299_v3  ;;  %v1374_v29 = vmul.f32 %v3193_v9, %v4340_v44  ;;  %v3194_v3 = vld [vmem:[%s4565_s1 + $0x6] ss:$0 sm:$0xff]  ;;  %v3195_v18 = vld [vmem:[%s4565_s1 + $0x7] ss:$0 sm:$0xff] }
 0x168   : > { %v923_v25 = vmax.f32 %v915_v58, 0.0  ;;  %v903_v47 = vadd.f32 %v895_v55, %v838_v12  ;;  %v840_v12 = vadd.f32 %v832_v39, %v775_v8  ;;  %v1322_v37 = vadd.f32 %v1314_v33, %v4196_v49 }
 0x169   : > { %v627_v11 = vpop.permute.xlu1 %626  ;;  %v1411_v59 = vpop.permute.xlu0 %1410  ;;  %v582_v39 = vadd.f32 %v574_v0, %v517_v61 }
 0x16a   : > { %v2956_v17 = vpack.c.bf16 %v923_v25, %v923_v25  ;;  %v917_v1 = vadd.f32 %v3934_v41, %v903_v47  ;;  %v1705_v20 = vmul.f32 %v3892_v30, %v1411_v59  ;;  %v1081_v47 = vadd.f32 %v1075_v27, %v4297_v57 }
 0x16b   : > { %v1422_v57 = vmul.f32 %v3194_v3, %v1411_v59  ;;  %v1382_v8 = vadd.f32 %v1374_v29, %v1322_v37 }
 0x16c   : > { %v2222_v34 = vshll.u32 %v2956_v17, 16  ;;  %v925_v13 = vmax.f32 %v917_v1, 0.0  ;;  %v1711_v63 = vadd.f32 %v1705_v20, %v1699_v48  ;;  %v639_v1 = vmul.f32 %v3191_v10, %v627_v11 }
 0x16d   : > { %v692_v50 = vpop.permute.xlu1 %691  ;;  %v876_v24 = vpop.permute.xlu0 %875  ;;  %v1430_v27 = vadd.f32 %v1422_v57, %v1382_v8  ;;  %v2372_v57 = vrot.slane %v2370_v60, 5 }
 0x16e   : > { %v2224_v58 = vrot.slane %v2222_v34, 5  ;;  %v2958_v42 = vpack.c.bf16 %v925_v13, %v925_v13  ;;  %v1717_v54 = vadd.f32 %v3934_v41, %v1711_v63  ;;  %v897_v55 = vmul.f32 %v3892_v30, %v876_v24 }
 0x16f   : > { %v1053_v30 = vmul.f32 %v3191_v10, %v4324_v15  ;;  %v3175_v15 = vld [vmem:[%s4567_s3 + $0x68] sm:$0xff]   ;;  %v704_v13 = vmul.f32 %v3193_v9, %v692_v50  ;;  %v1077_v59 = vmul.f32 %v3194_v3, %v876_v24  ;;  %v647_v50 = vadd.f32 %v639_v1, %v582_v39 }
 0x170   : > { %v2225_v23 = vsel %vm4380_vm3, %v4332_v40, %v2224_v58  ;;  %v2236_v25 = vshll.u32 %v2958_v42, 16  ;;  %v1723_v49 = vmax.f32 %v1717_v54, 0.0  ;;  %v905_v5 = vadd.f32 %v897_v55, %v840_v12 }
 0x171   : > { %v1105_v35 = vpop.permute.xlu1 %1104  ;;  %v1094_v32 = vpop.permute.xlu0 %1093  ;;  %v1059_v20 = vadd.f32 %v1053_v30, %v1014_v14  ;;  %v712_v55 = vadd.f32 %v704_v13, %v647_v50 }
 0x172   : > { %v1120_v43 = vmul.f32 %v3878_v26, %v1105_v35  ;;  %v2238_v31 = vrot.slane %v2236_v25, 5  ;;  %v2952_v17 = vpack.c.bf16 %v1723_v49, %v1723_v49  ;;  %v919_v48 = vadd.f32 %v3934_v41, %v905_v5 }
 0x173   : > { %v1118_v40 = vmul.f32 %v3878_v26, %v1094_v32 }
 0x174   : > { %v1126_v44 = vadd.f32 %v1120_v43, %v1081_v47  ;;  %v927_v2 = vmax.f32 %v919_v48, 0.0  ;;  %3048 = vmatmul.mubr.msk.bf16.vlgmr.msra.gmra.mrb[8].mxu0 %vm1756_vm0, %v2952_v17  ;;  %v4417_v26 = vsel %vm4380_vm3, %v4357_v38, %v2238_v31  ;;  %v3179_v38 = vld [vmem:[%s4567_s3 + $0x80] sm:$0xff]  }
 0x175   : > { %v1124_v33 = vadd.f32 %v1118_v40, %v1079_v56  ;;  %v757_v34 = vpop.permute.xlu1 %756  ;;  %v1459_v10 = vpop.permute.xlu0 %1458  ;;  %v2903_v63 = vcombine.low %v2225_v23, %v4417_v26  ;;  %3060 = vmatpush3.bf16.msra.mxu0 %v4177_v46 }
 0x176   : > { %v1138_v11 = vadd.f32 %v1132_v36, %v1126_v44  ;;  %v2959_v14 = vpack.c.bf16 %v927_v2, %v927_v2  ;;  %v1470_v58 = vmul.f32 %v3195_v18, %v1459_v10  ;;  %3061 = vmatprep.subr.bf16.mxu0 %v3175_v15  ;;  %v2247_v36 = vrot.slane %v2246_v19, 4 }
 0x177   : > { %v1136_v61 = vadd.f32 %v1130_v16, %v1124_v33  ;;  %3063 = vmatprep.mubr.msk.bf16.mxu0 %vm1756_vm0, %v2903_v63  ;;  %v1071_v16 = vadd.f32 %v1065_v7, %v1059_v20  ;;  %v769_v42 = vmul.f32 %v3194_v3, %v757_v34  ;;  %v2369_v7 = vrot.slane %v2367_v4, 4  ;;  %v3181_v4 = vld [vmem:[%s4567_s3 + $0x88] sm:$0xff]  }
 0x178   : > { %v1144_v46 = vadd.f32 %v3934_v41, %v1138_v11  ;;  %v2249_v24 = vshll.u32 %v2959_v14, 16  ;;  %v1478_v45 = vadd.f32 %v1470_v58, %v1430_v27  ;;  %v1134_v49 = vmul.f32 %v3196_v53, %v757_v34  ;;  %v3197_v34 = vld [vmem:[%s4566_s2] ss:$0 sm:$0xff] }
 0x179   : > { %v1142_v12 = vadd.f32 %v3934_v41, %v1136_v61  ;;  %v1507_v54 = vpop.permute.xlu1 %1506  ;;  %v1116_v19 = vpop.permute.xlu0 %1115  ;;  %3062 = vmatpush3.bf16.msra.mxu0 %v3175_v15  ;;  %v1083_v0 = vadd.f32 %v1077_v59, %v1071_v16  ;;  %v777_v29 = vadd.f32 %v769_v42, %v712_v55  ;;  %v2460_v44 = vshrl.u32 %v4155_v51, 16 }
 0x17a   : > { %v1150_v37 = vmax.f32 %v1144_v46, 0.0  ;;  %v1518_v6 = vmul.f32 %v3196_v53, %v1507_v54  ;;  %v2251_v9 = vrot.slane %v2249_v24, 5  ;;  %v1122_v30 = vmul.f32 %v3195_v18, %v1116_v19  ;;  %3075 = vmatprep.subr.bf16.mxu0 %v3179_v38 }
 0x17b   : > { %v1148_v23 = vmax.f32 %v1142_v12, 0.0  ;;  %v2373_v63 = vor.u32 %v2372_v57, %v2369_v7  ;;  %v2462_v14 = vrot.slane %v2460_v44, 4 }
 0x17c   : > { %v2963_v25 = vpack.c.bf16 %v1150_v37, %v1150_v37  ;;  %v1526_v5 = vadd.f32 %v1518_v6, %v1478_v45  ;;  %v2252_v35 = vsel %vm4380_vm3, %v2247_v36, %v2251_v9  ;;  %v1128_v47 = vadd.f32 %v1122_v30, %v1083_v0 }
 0x17d   : > { %v2961_v56 = vpack.c.bf16 %v1148_v23, %v1148_v23  ;;  %v887_v43 = vpop.permute.xlu1 %886  ;;  %v822_v17 = vpop.permute.xlu0 %821  ;;  %v2904_v40 = vcombine.low %v2252_v35, %v2252_v35  ;;  %v2921_v3 = vcombine.low %v4417_v26, %v2252_v35  ;;  %v3180_v26 = vld [vmem:[%s4567_s3 + $0x78] sm:$0xff]   ;;  %v2374_v36 = vrot.slane %v2373_v63, 4 }
 0x17e   : > { %v2363_v32 = vshll.u32 %v2963_v25, 16  ;;  %v1534_v31 = vadd.f32 %v3934_v41, %v1526_v5  ;;  %v899_v48 = vmul.f32 %v3196_v53, %v887_v43  ;;  %v1140_v39 = vadd.f32 %v1134_v49, %v1128_v47  ;;  %v3183_v49 = vld [vmem:[%s4569_s5 + $0x10] sm:$0xff]   ;;  %v3184_v5 = vld [vmem:[%s4569_s5 + $0x8] sm:$0xff]   ;;  %v3185_v35 = vld [vmem:[%s4569_s5 + $0x18] sm:$0xff]  }
 0x17f   : > { %v2349_v15 = vshll.u32 %v2961_v56, 16  ;;  %v834_v1 = vmul.f32 %v3195_v18, %v822_v17  ;;  %3064 = vmatmul.mubr.msk.bf16.vlgmr.msra.gmra.mrb[12].mxu0 %vm1756_vm0, %v2904_v40  ;;  %v2463_v41 = vshll.u32 %v4155_v51, 16  ;;  %v3278_v25 = vmov 0.0  }
 0x180   : > { %v2365_v20 = vrot.slane %v2363_v32, 5  ;;  %v1542_v2 = vmax.f32 %v1534_v31, 0.0  ;;  %v1146_v8 = vadd.f32 %v3197_v34, %v1140_v39  ;;  %3079 = vmatprep.mubr.msk.bf16.mxu0 %vm1756_vm0, %v2921_v3  ;;  %3076 = vmatpush3.bf16.msra.mxu0 %v3179_v38 }
 0x181   : > { %v2351_v33 = vrot.slane %v2349_v15, 5  ;;  %v842_v13 = vadd.f32 %v834_v1, %v777_v29  ;;  %3077 = vmatprep.subr.bf16.mxu0 %v3181_v4  ;;  %v2465_v61 = vrot.slane %v2463_v41, 5 }
 0x182   : > { %v2954_v28 = vpack.c.bf16 %v1542_v2, %v1542_v2  ;;  %v2366_v60 = vsel %vm4380_vm3, %v4314_v21, %v2365_v20  ;;  %v1152_v51 = vmax.f32 %v1146_v8, 0.0 }
 0x183   : > { %v907_v11 = vadd.f32 %v899_v48, %v842_v13  ;;  %v2352_v10 = vsel %vm4380_vm3, %v4312_v22, %v2351_v33  ;;  %v2466_v50 = vor.u32 %v2465_v61, %v2462_v14 }
 0x184   : > { %3056 = vmatmul.mubr.msk.bf16.vlgmr.msra.gmra.mrb[8].mxu1 %vm1756_vm0, %v2954_v28  ;;  %v2914_v59 = vcombine.low %v2352_v10, %v2366_v60  ;;  %v2964_v18 = vpack.c.bf16 %v1152_v51, %v1152_v51  ;;  %3078 = vmatpush3.bf16.msra.mxu0 %v3181_v4 }
 0x185   : > { %v921_v58 = vadd.f32 %v3197_v34, %v907_v11  ;;  %3068 = vmatpush3.bf16.msra.mxu1 %v4280_v62  ;;  %v2467_v12 = vrot.slane %v2466_v50, 4  ;;  %3091 = vmatprep.subr.bf16.mxu0 %v3278_v25 }
 0x186   : > { %3071 = vmatprep.mubr.msk.bf16.mxu1 %vm1756_vm0, %v2914_v59  ;;  %3069 = vmatprep.subr.bf16.mxu1 %v3180_v26  ;;  %v2376_v21 = vshll.u32 %v2964_v18, 16 }
 0x187   : > { %v929_v38 = vmax.f32 %v921_v58, 0.0 }
 0x188   : > { %v2378_v27 = vrot.slane %v2376_v21, 5 }
 0x189   : > { %v2965_v22 = vpack.c.bf16 %v929_v38, %v929_v38  ;;  %3070 = vmatpush3.bf16.msra.mxu1 %v3180_v26 }
 0x18a   : > { %v2379_v16 = vsel %vm4380_vm3, %v2374_v36, %v2378_v27  ;;  %3083 = vmatprep.subr.bf16.mxu1 %v3278_v25 }
 0x18b   : > { %v2469_v46 = vshll.u32 %v2965_v22, 16  ;;  %v2915_v24 = vcombine.low %v2379_v16, %v2379_v16 }
 0x18d   : > { %v2471_v42 = vrot.slane %v2469_v46, 5  ;;  %3072 = vmatmul.mubr.msk.bf16.vlgmr.msra.gmra.mrb[12].mxu1 %vm1756_vm0, %v2915_v24 }
 0x18e   : > { %3087 = vmatprep.mubr.msk.bf16.mxu1 %vm3279_vm4, %v3278_v25  ;;  %3084 = vmatpush3.bf16.msra.mxu1 %v3183_v49 }
 0x18f   : > { %v2472_v62 = vsel %vm4380_vm3, %v2467_v12, %v2471_v42  ;;  %3085 = vmatprep.subr.bf16.mxu1 %v3278_v25  ;;  %v2927_v12 = vld [vmem:[%s4568_s4] ss:$0 sm:$0xff] }
 0x190   : > { %v2922_v54 = vcombine.low %v2472_v62, %v2472_v62 }
 0x192   : > { %3080 = vmatmul.mubr.msk.bf16.vlgmr.msra.gmra.mrb[16].mxu0 %vm1756_vm0, %v2922_v54  ;;  %3086 = vmatpush3.bf16.msra.mxu1 %v3185_v35 }
 0x193   : > { %3095 = vmatprep.mubr.msk.bf16.mxu0 %vm3279_vm4, %v3278_v25  ;;  %3092 = vmatpush3.bf16.msra.mxu0 %v3182_v52 }
 0x194   : > { %3093 = vmatprep.subr.bf16.mxu0 %v3278_v25  ;;  %3099 = vmatprep.subr.bf16.mxu1 %v3278_v25 }
 0x197   : > { %3094 = vmatpush3.bf16.msra.mxu0 %v3184_v5 }
 0x1bf   : > { %v3017_v55 = vpop.f32.mrb[0].mxu0 }
 0x1c0   : > { %v1797_v37 = vpop.f32.mrb[1].mxu0 }
 0x1c1   : > { %v3025_v45 = vpop.f32.mrb[0].mxu1  ;;  %v3018_v53 = vpop.f32.mrb[2].mxu0 }
 0x1c2   : > { %v1880_v6 = vadd.f32 %v3025_v45, %v3017_v55  ;;  %v1871_v19 = vpop.f32.mrb[1].mxu1  ;;  %v1800_v0 = vpop.f32.mrb[3].mxu0 }
 0x1c3   : > { %v1872_v9 = vadd.f32 %v1871_v19, %v1797_v37  ;;  %v3026_v23 = vpop.f32.mrb[2].mxu1 }
 0x1c4   : > { %v1874_v30 = vpop.f32.mrb[3].mxu1 }
 0x1c5   : > { %v1875_v7 = vadd.f32 %v1874_v30, %v1800_v0 }
 0x1f7   : > { %v3033_v56 = vpop.f32.mrb[4].mxu0 }
 0x1f8   : > { %v1961_v29 = vadd.f32 %v3033_v56, %v1880_v6  ;;  %v1945_v47 = vpop.f32.mrb[5].mxu0 }
 0x1f9   : > { %v1959_v43 = vadd.f32 %v1945_v47, %v1872_v9  ;;  %v3034_v32 = vpop.f32.mrb[6].mxu0  ;;  %v3186_v9 = vld [vmem:[%s4569_s5 + $0x20] sm:$0xff]  }
 0x1fa   : > { %v1948_v31 = vpop.f32.mrb[7].mxu0 }
 0x1fb   : > { %v1960_v17 = vadd.f32 %v1948_v31, %v1875_v7  ;;  %v3187_v7 = vld [vmem:[%s4569_s5 + $0x28] sm:$0xff]  }
 0x225   : > { %v3041_v48 = vpop.f32.mrb[4].mxu1 }
 0x226   : > { %v2042_v40 = vadd.f32 %v3041_v48, %v1961_v29  ;;  %v2026_v4 = vpop.f32.mrb[5].mxu1 }
 0x227   : > { %v2040_v15 = vadd.f32 %v2026_v4, %v1959_v43  ;;  %v3042_v39 = vpop.f32.mrb[6].mxu1 }
 0x228   : > { %v2029_v1 = vpop.f32.mrb[7].mxu1 }
 0x229   : > { %v2041_v3 = vadd.f32 %v2029_v1, %v1960_v17 }
 0x247   : > { %v3049_v57 = vpop.f32.mrb[8].mxu0 }
 0x248   : > { %v2123_v44 = vadd.f32 %v3049_v57, %v2042_v40  ;;  %v2107_v20 = vpop.f32.mrb[9].mxu0 }
 0x249   : > { %v2121_v2 = vadd.f32 %v2107_v20, %v2040_v15  ;;  %v3050_v41 = vpop.f32.mrb[10].mxu0 }
 0x24a   : > { %v2110_v33 = vpop.f32.mrb[11].mxu0 }
 0x24b   : > { %v2122_v34 = vadd.f32 %v2110_v33, %v2041_v3 }
 0x252   : > { %v3065_v8 = vpop.f32.mrb[12].mxu0 }
 0x253   : > { %v2314_v13 = vpop.f32.mrb[13].mxu0 }
 0x254   : > { %v3066_v28 = vpop.f32.mrb[14].mxu0 }
 0x255   : > { %v2317_v60 = vpop.f32.mrb[15].mxu0 }
 0x257   : > { %v3057_v26 = vpop.f32.mrb[8].mxu1 }
 0x258   : > { %v2200_v51 = vadd.f32 %v3057_v26, %v2123_v44  ;;  %v2184_v11 = vpop.f32.mrb[9].mxu1 }
 0x259   : > { %v2198_v10 = vadd.f32 %v2184_v11, %v2121_v2  ;;  %v3058_v63 = vpop.f32.mrb[10].mxu1 }
 0x25a   : > { %v2187_v59 = vpop.f32.mrb[11].mxu1  ;;  %v2330_v14 = vadd.f32 %v3065_v8, %v2200_v51 }
 0x25b   : > { %v2199_v61 = vadd.f32 %v2187_v59, %v2122_v34  ;;  %v2328_v18 = vadd.f32 %v2314_v13, %v2198_v10 }
 0x25d   : > { %v2329_v58 = vadd.f32 %v2317_v60, %v2199_v61 }
 0x260   : > { %v3073_v21 = vpop.f32.mrb[12].mxu1 }
 0x261   : > { %v2457_v38 = vadd.f32 %v3073_v21, %v2330_v14  ;;  %v2441_v36 = vpop.f32.mrb[13].mxu1 }
 0x262   : > { %v2455_v50 = vadd.f32 %v2441_v36, %v2328_v18  ;;  %v3074_v27 = vpop.f32.mrb[14].mxu1 }
 0x263   : > { %v2444_v22 = vpop.f32.mrb[15].mxu1 }
 0x264   : > { %v2456_v46 = vadd.f32 %v2444_v22, %v2329_v58 }
 0x265   : > { %v3081_v16 = vpop.f32.mrb[16].mxu0 }
 0x266   : > { %v2548_v24 = vadd.f32 %v3081_v16, %v2457_v38  ;;  %v2532_v42 = vpop.f32.mrb[17].mxu0 }
 0x267   : > { %v2546_v62 = vadd.f32 %v2532_v42, %v2455_v50  ;;  %v3082_v54 = vpop.f32.mrb[18].mxu0 }
 0x268   : > { %v2535_v55 = vpop.f32.mrb[19].mxu0  ;;  %v2558_v23 = vadd.f32 %v2927_v12, %v2548_v24 }
 0x269   : > { %v2556_v37 = vadd.f32 %v2927_v12, %v2546_v62  ;;  %v2547_v45 = vadd.f32 %v2535_v55, %v2456_v46 }
 0x26a   : > { %v2561_v52 = vmax.f32 %v2558_v23, 0.0 }
 0x26b   : > { %v2559_v53 = vmax.f32 %v2556_v37, 0.0  ;;  %v2557_v6 = vadd.f32 %v2927_v12, %v2547_v45 }
 0x26c   : > { %v2682_v49 = vpack.c.bf16 %v2561_v52, %v2561_v52 }
 0x26d   : > { %v2562_v19 = vpack.c.bf16 %v2559_v53, %v2559_v53  ;;  %v2560_v0 = vmax.f32 %v2557_v6, 0.0 }
 0x26f   : > { %v2567_v30 = vpack.c.bf16 %v2560_v0, %v2560_v0  ;;  %3096 = vmatmul.mubr.msk.bf16.vlgmr.msra.gmra.mrb[20].mxu0 %vm1756_vm0, %v2562_v19 }
 0x271   : > { %3088 = vmatmul.mubr.msk.bf16.vlgmr.msra.gmra.mrb[16].mxu1 %vm1756_vm0, %v2567_v30 }
 0x272   : > { %3100 = vmatpush3.bf16.msra.mxu1 %v3186_v9  ;;  %3103 = vmatprep.mubr.msk.bf16.mxu1 %vm3279_vm4, %v3278_v25 }
 0x273   : > { %3101 = vmatprep.subr.bf16.mxu1 %v3278_v25  ;;  %v2937_v25 = vld [vmem:[%s4570_s6] ss:$0 sm:$0xff] }
 0x276   : > { %3102 = vmatpush3.bf16.msra.mxu1 %v3187_v7 }
 0x279   : > { %3104 = vmatmul.mubr.msk.bf16.vlgmr.msra.gmra.mrb[20].mxu1 %vm1756_vm0, %v2682_v49 }
 0x342   : > { %v2676_v5 = vpop.f32.mrb[20].mxu0 }
 0x343   : > { %v3097_v35 = vpop.f32.mrb[21].mxu0 }
 0x344   : > { %v2621_v56 = vpop.f32.mrb[16].mxu1  ;;  %v2679_v29 = vpop.f32.mrb[22].mxu0 }
 0x345   : > { %v2677_v47 = vadd.f32 %v2676_v5, %v2621_v56  ;;  %v3089_v43 = vpop.f32.mrb[17].mxu1  ;;  %v3098_v32 = vpop.f32.mrb[23].mxu0 }
 0x346   : > { %v2624_v31 = vpop.f32.mrb[18].mxu1 }
 0x347   : > { %v3090_v17 = vpop.f32.mrb[19].mxu1 }
 0x34c   : > { %v2736_v48 = vpop.f32.mrb[20].mxu1 }
 0x34d   : > { %v2742_v40 = vadd.f32 %v2736_v48, %v2677_v47  ;;  %v3105_v4 = vpop.f32.mrb[21].mxu1 }
 0x34e   : > { %v2739_v15 = vpop.f32.mrb[22].mxu1 }
 0x34f   : > { %v2750_v39 = vadd.f32 %v2937_v25, %v2742_v40  ;;  %v3106_v1 = vpop.f32.mrb[23].mxu1 }
 0x351   : > { %2751 = vst.msk [vmem:[%s295_s30] sm:$0xff] %vm1756_vm0, %v2750_v39 }
 0x352   : > { %3211 = shalt.err (!%p3208_p5)
}
 0x353   : > { %s3212_s19 = scalar_lea.hbm %s4516_s15, 128  ;;  %s3216_s23 = scalar_lea.hbm %s4571_s7, 256 }
 0x354   : > { %p3213_p6 = scmp.ne.s32.totalorder %s4516_s15, %s3212_s19  ;;  %p3217_p10 = scmp.lt.u32.totalorder %s4516_s15, %s4571_s7 }
 0x355   : > { %p3218_p11 = scmp.lt.u32.totalorder %s3216_s23, %s3212_s19  ;;  %p3220_p13 = scmp.lt.u32.totalorder %s3212_s19, %s4516_s15 }
 0x356   : > { %p3214_p7 = pnand %p3213_p6, %p3361_p4 }
 0x357   : > { %p3219_p12 = por %p3218_p11, %p3217_p10 }
 0x358   : > { %p3215_p9 = pneg %p3214_p7 }
 0x359   : > { %p3221_p0 = por %p3220_p13, %p3219_p12 }
 0x35b   : > { %p3222_p1 = pnand %p3221_p0, %p3215_p9 }
 0x35d   : > { %3225 = shalt.err (!%p3222_p1)
}
 0x35e   : > { %3107 = dma.vmem_to_hbm [thread:$0]  (%p3361_p4), %s4518_s8, 128, %s4516_s15, %s2753_s27  }
 0x35f PF: > { %p3113_p2 = scmp.ge.s32.totalorder %s3276_s29, 2  ;;  %s2779_s12 = sand.u32 1, %s3256_s24  }
 0x360   : > { %s2780_s16 = scalar_lea.sflag [#allocation3], %s2779_s12 }
 0x361   : > { %p3110_p3 = pnand %p3113_p2, %p3368_p8 }
 0x363   : > { %3251 = dma.done.wait (!%p3110_p3), %s2780_s16, 128  }
 0x364   : > { %3253 = vsyncadd (!%p3110_p3), %s2780_s16, 4294967168  ;;  %s20_s29 = sadd.s32 1, %s3276_s29   ;;  %s4640_s24 = smov %s3260_s25 }
 0x365   : > { %p17_p5 = scmp.ge.s32.totalorder %s20_s29, 4   ;;  %s4641_s25 = smov %s3264_s26 }
 0x366   : > { %s4642_s26 = smov %s3374_s14  ;;  %s4643_s27 = smov %s3272_s28 }
 0x367   : > { %s4644_s28 = smov %s4646_s9  ;;  %19 = sbr.rel (!%p17_p5) target bundleno = 4 (0x4), region = 83 }
 0x36e   :  { %2785 = vsyncpa [#allocation3], 1 }
 0x36f   :  { %2787 = vsyncpa [#allocation3 + $0x1], 1 }

</bundles_post_ra>
